<compile_context>
chip_gen: v7x
topology: tpu7x:2x2x1
jax: 0.10.0
libtpu: 0.0.40
codegen_flags: <defaults>
</compile_context>

<pallas_src>
import functools

import jax
import jax.numpy as jnp
import numpy as np
from jax.experimental import pallas as pl
from jax.experimental.pallas import tpu as pltpu

NEG_SLOPE = 0.01  # PyTorch LeakyReLU default


def _cdiv(a, b):
    return (a + b - 1) // b


def _round_up(a, b):
    return _cdiv(a, b) * b


# ---------------- Pallas kernels ----------------

def _stack_taps(xa, xh, offs, tm):
    """xa: (C, tm), xh: (C, hb)  ->  (27*C, tm) stencil-tap operand."""
    x = jnp.concatenate([xa, xh], axis=1)                        # (C, tm+hb)
    return jnp.concatenate([x[:, off:off + tm] for off in offs], axis=0)


def _conv12_kernel(xa_ref, xh_ref, w1_ref, b1_ref, w2_ref, b2_ref, o_ref,
                   *, offs, tm):
    taps = _stack_taps(xa_ref[0], xh_ref[0], offs, tm)           # (27C, tm) bf16
    # conv1: a single MXU matmul with K = 27*C, f32 accumulate.
    h = jnp.dot(w1_ref[...], taps, preferred_element_type=jnp.float32)
    h = h + b1_ref[...]                                          # (2C, tm) f32
    h = jnp.where(h > 0, h, NEG_SLOPE * h)
    # conv2 is a 1x1x1 conv -> plain channel matmul (bf16 operands, f32 acc).
    y = jnp.dot(w2_ref[...], h.astype(w2_ref.dtype),
                preferred_element_type=jnp.float32)
    y = y + b2_ref[...]                                          # (C, tm) f32
    y = jnp.where(y > 0, y, NEG_SLOPE * y)
    o_ref[0] = y.astype(o_ref.dtype)


def _conv3_kernel(xa_ref, xh_ref, w3_ref, b3_ref, o_ref, *, offs, tm):
    taps = _stack_taps(xa_ref[0], xh_ref[0], offs, tm)           # (27C, tm) bf16
    # conv3 (C -> 1, k3): single matmul against an 8-row (zero-padded out
    # channel) weight matrix; keeps the reduction on the MXU.
    y = jnp.dot(w3_ref[...], taps, preferred_element_type=jnp.float32)  # (8, tm)
    y = y[0:1] + b3_ref[...]                                     # (1, tm) f32
    o_ref[0] = y.astype(o_ref.dtype)


# ---------------- tiling / layout helpers ----------------

def _tile_params(D, H, W, tm_req):
    Hp, Wp = H + 2, W + 2
    plane = Hp * Wp
    max_off = 2 * plane + 2 * Wp + 2            # largest 3x3x3 stencil offset
    hb = _round_up(max_off, 128)                # halo block rows (lane multiple)
    R_out = D * plane                           # output rows (incl. frame cols)
    tm = max(hb, min(_round_up(tm_req, hb), _round_up(R_out, hb)))
    T = _cdiv(R_out, tm)
    R_alloc = T * tm + hb                       # rows the kernels may touch
    offs = tuple(kd * plane + kh * Wp + kw
                 for kd in range(3) for kh in range(3) for kw in range(3))
    return offs, plane, hb, tm, T, R_out, R_alloc


def _flatten_padded(x5, plane, R_alloc):
    """(N, C, D, H, W) -> bf16 zero-padded frame flattened to >= R_alloc rows.

    Single lax.pad: the spatial (1,1,1) zero padding plus enough extra depth
    planes that the flattened row count covers every block the kernels read.
    """
    N, C, D, H, W = x5.shape
    d_hi = 1 + _cdiv(max(R_alloc - (D + 2) * plane, 0), plane)
    xp = jnp.pad(x5.astype(jnp.bfloat16),
                 ((0, 0), (0, 0), (1, d_hi), (1, 1), (1, 1)))
    return xp.reshape(N, C, -1)


# ---------------- pallas_call wrappers ----------------

def _run_conv12(flat, w1s, b1, w2s, b2, offs, tm, hb, T):
    N, C, _ = flat.shape
    Cout = w2s.shape[0]
    r = tm // hb
    kern = functools.partial(_conv12_kernel, offs=offs, tm=tm)
    return pl.pallas_call(
        kern,
        out_shape=jax.ShapeDtypeStruct((N, Cout, T * tm), jnp.bfloat16),
        grid=(N, T),
        in_specs=[
            pl.BlockSpec((1, C, tm), lambda n, t: (n, 0, t)),
            pl.BlockSpec((1, C, hb), lambda n, t: (n, 0, (t + 1) * r)),
            pl.BlockSpec(w1s.shape, lambda n, t: (0, 0)),
            pl.BlockSpec(b1.shape, lambda n, t: (0, 0)),
            pl.BlockSpec(w2s.shape, lambda n, t: (0, 0)),
            pl.BlockSpec(b2.shape, lambda n, t: (0, 0)),
        ],
        out_specs=pl.BlockSpec((1, Cout, tm), lambda n, t: (n, 0, t)),
        compiler_params=pltpu.CompilerParams(
            dimension_semantics=("parallel", "parallel"),
            vmem_limit_bytes=64 * 1024 * 1024),
    )(flat, flat, w1s, b1, w2s, b2)


def _run_conv3(flat, w3s, b3, offs, tm, hb, T):
    N, C, _ = flat.shape
    r = tm // hb
    kern = functools.partial(_conv3_kernel, offs=offs, tm=tm)
    return pl.pallas_call(
        kern,
        out_shape=jax.ShapeDtypeStruct((N, 1, T * tm), jnp.float32),
        grid=(N, T),
        in_specs=[
            pl.BlockSpec((1, C, tm), lambda n, t: (n, 0, t)),
            pl.BlockSpec((1, C, hb), lambda n, t: (n, 0, (t + 1) * r)),
            pl.BlockSpec(w3s.shape, lambda n, t: (0, 0)),
            pl.BlockSpec(b3.shape, lambda n, t: (0, 0)),
        ],
        out_specs=pl.BlockSpec((1, 1, tm), lambda n, t: (n, 0, t)),
        compiler_params=pltpu.CompilerParams(
            dimension_semantics=("parallel", "parallel"),
            vmem_limit_bytes=64 * 1024 * 1024),
    )(flat, flat, w3s, b3)


# ---------------- parameters / forward ----------------

def init_vrm_params(key, dim):
    k1, k2, k3, k4, k5, k6 = jax.random.split(key, 6)
    return dict(
        w1=0.1 * jax.random.normal(k1, (2 * dim, dim, 3, 3, 3), jnp.float32),
        b1=0.1 * jax.random.normal(k2, (2 * dim,), jnp.float32),
        w2=0.1 * jax.random.normal(k3, (dim, 2 * dim, 1, 1, 1), jnp.float32),
        b2=0.1 * jax.random.normal(k4, (dim,), jnp.float32),
        w3=0.1 * jax.random.normal(k5, (1, dim, 3, 3, 3), jnp.float32),
        b3=0.1 * jax.random.normal(k6, (1,), jnp.float32),
    )


def vrm_forward(x_ncdhw, params, tm=1024):
    """x: (N, dim, D, H, W)  ->  (N, 1, D, H, W)"""
    N, C, D, H, W = x_ncdhw.shape
    Hp, Wp = H + 2, W + 2
    offs, plane, hb, tmx, T, R_out, R_alloc = _tile_params(D, H, W, tm)

    # Weights in stacked-tap matmul form: column index = tap*C + in_channel,
    # tap order (kd, kh, kw) matching the in-kernel offset list.  bf16 MXU ops.
    w1s = jnp.transpose(params["w1"], (0, 2, 3, 4, 1)) \
             .reshape(2 * C, 27 * C).astype(jnp.bfloat16)
    b1 = params["b1"].reshape(2 * C, 1)
    w2s = params["w2"][:, :, 0, 0, 0].astype(jnp.bfloat16)          # (C, 2C)
    b2 = params["b2"].reshape(C, 1)
    w3r = jnp.transpose(params["w3"], (0, 2, 3, 4, 1)).reshape(1, 27 * C)
    w3s = jnp.concatenate([w3r, jnp.zeros((7, 27 * C), w3r.dtype)],
                          axis=0).astype(jnp.bfloat16)              # (8, 27C)
    b3 = params["b3"].reshape(1, 1)

    # conv1 + LeakyReLU + conv2 + LeakyReLU (fused kernel, bf16 in/out)
    flat1 = _flatten_padded(x_ncdhw, plane, R_alloc)                # (N,C,rows) bf16
    y2f = _run_conv12(flat1, w1s, b1, w2s, b2, offs, tmx, hb, T)    # (N,C,T*tm) bf16

    # inter-kernel glue: one slice + one pad (spatial + tail padding folded)
    y2 = y2f[:, :, :R_out].reshape(N, C, D, Hp, Wp)[:, :, :, :H, :W]
    flat3 = _flatten_padded(y2, plane, R_alloc)                     # bf16

    # conv3 (stacked-tap MXU matmul, f32 output)
    y3f = _run_conv3(flat3, w3s, b3, offs, tmx, hb, T)              # (N,1,T*tm) f32
    y3 = y3f[:, :, :R_out].reshape(N, 1, D, Hp, Wp)[:, :, :, :H, :W]
    return y3


# ---------------- pure-JAX reference ----------------

def vrm_reference(x, params):
    def conv(z, w, b, pad):
        y = jax.lax.conv_general_dilated(
            z, w, (1, 1, 1), [(pad, pad)] * 3,
            dimension_numbers=("NCDHW", "OIDHW", "NCDHW"),
            precision=jax.lax.Precision.HIGHEST)
        return y + b.reshape(1, -1, 1, 1, 1)

    h = conv(x, params["w1"], params["b1"], 1)
    h = jnp.where(h > 0, h, NEG_SLOPE * h)
    h = conv(h, params["w2"], params["b2"], 0)
    h = jnp.where(h > 0, h, NEG_SLOPE * h)
    return conv(h, params["w3"], params["b3"], 1)


if __name__ == "__main__":
    key = jax.random.PRNGKey(0)
    kx, kp = jax.random.split(key)
    N, dim, D, H, W = 2, 4, 4, 8, 8
    x = jax.random.normal(kx, (N, dim, D, H, W), jnp.float32)
    params = init_vrm_params(kp, dim)

    fwd = jax.jit(vrm_forward)
    out = fwd(x, params)
    out = jax.block_until_ready(out)
    assert out.shape == (N, 1, D, H, W)

    ref = vrm_reference(x, params)
    # bf16 MXU operands + bf16 y2 intermediate vs HIGHEST-precision reference
    # -> loosened tolerance (documented, intentional).
    np.testing.assert_allclose(np.asarray(out), np.asarray(ref),
                               rtol=2e-2, atol=2e-2)
    print("KERNEL_OK")
</pallas_src>

<mosaic_0001>
module attributes {stable_mosaic.version = 11 : i64} {
  func.func @_conv12_kernel(%arg0: i32, %arg1: i32, %arg2: memref<1x4x512xbf16, #tpu.memory_space<vmem>>, %arg3: memref<1x4x256xbf16, #tpu.memory_space<vmem>>, %arg4: memref<8x108xbf16, #tpu.memory_space<vmem>>, %arg5: memref<8x1xf32, #tpu.memory_space<vmem>>, %arg6: memref<4x8xbf16, #tpu.memory_space<vmem>>, %arg7: memref<4x1xf32, #tpu.memory_space<vmem>>, %arg8: memref<1x4x512xbf16, #tpu.memory_space<vmem>>) attributes {dimension_semantics = [#tpu.dimension_semantics<parallel>, #tpu.dimension_semantics<parallel>], iteration_bounds = array<i64: 2, 1>, scalar_prefetch = 0 : i64, scratch_operands = 0 : i64, tpu.core_type = #tpu.core_type<tc>, window_params = [{transform_indices = @transform_0, window_bounds = array<i64: 1, 4, 512>}, {transform_indices = @transform_1, window_bounds = array<i64: 1, 4, 256>}, {pipeline_mode = #tpu.pipeline_mode<synchronous>, transform_indices = @transform_2, window_bounds = array<i64: 8, 108>}, {pipeline_mode = #tpu.pipeline_mode<synchronous>, transform_indices = @transform_3, window_bounds = array<i64: 8, 1>}, {pipeline_mode = #tpu.pipeline_mode<synchronous>, transform_indices = @transform_4, window_bounds = array<i64: 4, 8>}, {pipeline_mode = #tpu.pipeline_mode<synchronous>, transform_indices = @transform_5, window_bounds = array<i64: 4, 1>}, {transform_indices = @transform_6, window_bounds = array<i64: 1, 4, 512>}]} {
    %c0 = arith.constant 0 : index
    %c0_0 = arith.constant 0 : index
    %c0_1 = arith.constant 0 : index
    %0 = vector.load %arg2[%c0, %c0_0, %c0_1] : memref<1x4x512xbf16, #tpu.memory_space<vmem>>, vector<1x4x512xbf16>
    %1 = vector.shape_cast %0 : vector<1x4x512xbf16> to vector<4x512xbf16>
    %c0_2 = arith.constant 0 : index
    %c0_3 = arith.constant 0 : index
    %c0_4 = arith.constant 0 : index
    %2 = vector.load %arg3[%c0_2, %c0_3, %c0_4] : memref<1x4x256xbf16, #tpu.memory_space<vmem>>, vector<1x4x256xbf16>
    %3 = vector.shape_cast %2 : vector<1x4x256xbf16> to vector<4x256xbf16>
    %4 = tpu.concatenate %1, %3 in 1 : vector<4x512xbf16>, vector<4x256xbf16> -> vector<4x768xbf16>
    %5 = vector.extract_strided_slice %4 {offsets = [0, 0], sizes = [4, 512], strides = [1, 1]} : vector<4x768xbf16> to vector<4x512xbf16>
    %6 = vector.extract_strided_slice %4 {offsets = [0, 1], sizes = [4, 512], strides = [1, 1]} : vector<4x768xbf16> to vector<4x512xbf16>
    %7 = vector.extract_strided_slice %4 {offsets = [0, 2], sizes = [4, 512], strides = [1, 1]} : vector<4x768xbf16> to vector<4x512xbf16>
    %8 = vector.extract_strided_slice %4 {offsets = [0, 10], sizes = [4, 512], strides = [1, 1]} : vector<4x768xbf16> to vector<4x512xbf16>
    %9 = vector.extract_strided_slice %4 {offsets = [0, 11], sizes = [4, 512], strides = [1, 1]} : vector<4x768xbf16> to vector<4x512xbf16>
    %10 = vector.extract_strided_slice %4 {offsets = [0, 12], sizes = [4, 512], strides = [1, 1]} : vector<4x768xbf16> to vector<4x512xbf16>
    %11 = vector.extract_strided_slice %4 {offsets = [0, 20], sizes = [4, 512], strides = [1, 1]} : vector<4x768xbf16> to vector<4x512xbf16>
    %12 = vector.extract_strided_slice %4 {offsets = [0, 21], sizes = [4, 512], strides = [1, 1]} : vector<4x768xbf16> to vector<4x512xbf16>
    %13 = vector.extract_strided_slice %4 {offsets = [0, 22], sizes = [4, 512], strides = [1, 1]} : vector<4x768xbf16> to vector<4x512xbf16>
    %14 = vector.extract_strided_slice %4 {offsets = [0, 100], sizes = [4, 512], strides = [1, 1]} : vector<4x768xbf16> to vector<4x512xbf16>
    %15 = vector.extract_strided_slice %4 {offsets = [0, 101], sizes = [4, 512], strides = [1, 1]} : vector<4x768xbf16> to vector<4x512xbf16>
    %16 = vector.extract_strided_slice %4 {offsets = [0, 102], sizes = [4, 512], strides = [1, 1]} : vector<4x768xbf16> to vector<4x512xbf16>
    %17 = vector.extract_strided_slice %4 {offsets = [0, 110], sizes = [4, 512], strides = [1, 1]} : vector<4x768xbf16> to vector<4x512xbf16>
    %18 = vector.extract_strided_slice %4 {offsets = [0, 111], sizes = [4, 512], strides = [1, 1]} : vector<4x768xbf16> to vector<4x512xbf16>
    %19 = vector.extract_strided_slice %4 {offsets = [0, 112], sizes = [4, 512], strides = [1, 1]} : vector<4x768xbf16> to vector<4x512xbf16>
    %20 = vector.extract_strided_slice %4 {offsets = [0, 120], sizes = [4, 512], strides = [1, 1]} : vector<4x768xbf16> to vector<4x512xbf16>
    %21 = vector.extract_strided_slice %4 {offsets = [0, 121], sizes = [4, 512], strides = [1, 1]} : vector<4x768xbf16> to vector<4x512xbf16>
    %22 = vector.extract_strided_slice %4 {offsets = [0, 122], sizes = [4, 512], strides = [1, 1]} : vector<4x768xbf16> to vector<4x512xbf16>
    %23 = vector.extract_strided_slice %4 {offsets = [0, 200], sizes = [4, 512], strides = [1, 1]} : vector<4x768xbf16> to vector<4x512xbf16>
    %24 = vector.extract_strided_slice %4 {offsets = [0, 201], sizes = [4, 512], strides = [1, 1]} : vector<4x768xbf16> to vector<4x512xbf16>
    %25 = vector.extract_strided_slice %4 {offsets = [0, 202], sizes = [4, 512], strides = [1, 1]} : vector<4x768xbf16> to vector<4x512xbf16>
    %26 = vector.extract_strided_slice %4 {offsets = [0, 210], sizes = [4, 512], strides = [1, 1]} : vector<4x768xbf16> to vector<4x512xbf16>
    %27 = vector.extract_strided_slice %4 {offsets = [0, 211], sizes = [4, 512], strides = [1, 1]} : vector<4x768xbf16> to vector<4x512xbf16>
    %28 = vector.extract_strided_slice %4 {offsets = [0, 212], sizes = [4, 512], strides = [1, 1]} : vector<4x768xbf16> to vector<4x512xbf16>
    %29 = vector.extract_strided_slice %4 {offsets = [0, 220], sizes = [4, 512], strides = [1, 1]} : vector<4x768xbf16> to vector<4x512xbf16>
    %30 = vector.extract_strided_slice %4 {offsets = [0, 221], sizes = [4, 512], strides = [1, 1]} : vector<4x768xbf16> to vector<4x512xbf16>
    %31 = vector.extract_strided_slice %4 {offsets = [0, 222], sizes = [4, 512], strides = [1, 1]} : vector<4x768xbf16> to vector<4x512xbf16>
    %32 = tpu.concatenate %5, %6, %7, %8, %9, %10, %11, %12, %13, %14, %15, %16, %17, %18, %19, %20 in 0 : vector<4x512xbf16>, vector<4x512xbf16>, vector<4x512xbf16>, vector<4x512xbf16>, vector<4x512xbf16>, vector<4x512xbf16>, vector<4x512xbf16>, vector<4x512xbf16>, vector<4x512xbf16>, vector<4x512xbf16>, vector<4x512xbf16>, vector<4x512xbf16>, vector<4x512xbf16>, vector<4x512xbf16>, vector<4x512xbf16>, vector<4x512xbf16> -> vector<64x512xbf16>
    %33 = tpu.concatenate %21, %22, %23, %24, %25, %26, %27, %28, %29, %30, %31 in 0 : vector<4x512xbf16>, vector<4x512xbf16>, vector<4x512xbf16>, vector<4x512xbf16>, vector<4x512xbf16>, vector<4x512xbf16>, vector<4x512xbf16>, vector<4x512xbf16>, vector<4x512xbf16>, vector<4x512xbf16>, vector<4x512xbf16> -> vector<44x512xbf16>
    %34 = tpu.concatenate %32, %33 in 0 : vector<64x512xbf16>, vector<44x512xbf16> -> vector<108x512xbf16>
    %c0_5 = arith.constant 0 : index
    %c0_6 = arith.constant 0 : index
    %35 = vector.load %arg4[%c0_5, %c0_6] : memref<8x108xbf16, #tpu.memory_space<vmem>>, vector<8x108xbf16>
    %cst = arith.constant dense<0.000000e+00> : vector<8x512xf32>
    %36 = tpu.matmul %35, %34, %cst {dimension_numbers = #tpu.dot_dimension_numbers<[1], [0], [0], [1], [0, 0, 1, 1], [], []>} : vector<8x108xbf16>, vector<108x512xbf16>, vector<8x512xf32> -> vector<8x512xf32>
    %c0_7 = arith.constant 0 : index
    %c0_8 = arith.constant 0 : index
    %37 = vector.load %arg5[%c0_7, %c0_8] : memref<8x1xf32, #tpu.memory_space<vmem>>, vector<8x1xf32>
    %38 = vector.broadcast %37 : vector<8x1xf32> to vector<8x512xf32>
    %39 = arith.addf %36, %38 : vector<8x512xf32>
    %cst_9 = arith.constant 0.000000e+00 : f32
    %40 = vector.broadcast %cst_9 : f32 to vector<8x512xf32>
    %41 = arith.cmpf ogt, %39, %40 : vector<8x512xf32>
    %cst_10 = arith.constant 0.00999999977 : f32
    %42 = vector.broadcast %cst_10 : f32 to vector<8x512xf32>
    %43 = arith.mulf %42, %39 : vector<8x512xf32>
    %44 = arith.select %41, %39, %43 : vector<8x512xi1>, vector<8x512xf32>
    %c0_11 = arith.constant 0 : index
    %c0_12 = arith.constant 0 : index
    %45 = vector.load %arg6[%c0_11, %c0_12] : memref<4x8xbf16, #tpu.memory_space<vmem>>, vector<4x8xbf16>
    %46 = arith.truncf %44 : vector<8x512xf32> to vector<8x512xbf16>
    %cst_13 = arith.constant dense<0.000000e+00> : vector<4x512xf32>
    %47 = tpu.matmul %45, %46, %cst_13 {dimension_numbers = #tpu.dot_dimension_numbers<[1], [0], [0], [1], [0, 0, 1, 1], [], []>} : vector<4x8xbf16>, vector<8x512xbf16>, vector<4x512xf32> -> vector<4x512xf32>
    %c0_14 = arith.constant 0 : index
    %c0_15 = arith.constant 0 : index
    %48 = vector.load %arg7[%c0_14, %c0_15] : memref<4x1xf32, #tpu.memory_space<vmem>>, vector<4x1xf32>
    %49 = vector.broadcast %48 : vector<4x1xf32> to vector<4x512xf32>
    %50 = arith.addf %47, %49 : vector<4x512xf32>
    %cst_16 = arith.constant 0.000000e+00 : f32
    %51 = vector.broadcast %cst_16 : f32 to vector<4x512xf32>
    %52 = arith.cmpf ogt, %50, %51 : vector<4x512xf32>
    %cst_17 = arith.constant 0.00999999977 : f32
    %53 = vector.broadcast %cst_17 : f32 to vector<4x512xf32>
    %54 = arith.mulf %53, %50 : vector<4x512xf32>
    %55 = arith.select %52, %50, %54 : vector<4x512xi1>, vector<4x512xf32>
    %56 = arith.truncf %55 : vector<4x512xf32> to vector<4x512xbf16>
    %c0_18 = arith.constant 0 : index
    %c0_19 = arith.constant 0 : index
    %c0_20 = arith.constant 0 : index
    %57 = vector.load %arg8[%c0_18, %c0_19, %c0_20] : memref<1x4x512xbf16, #tpu.memory_space<vmem>>, vector<1x4x512xbf16>
    %58 = vector.shape_cast %57 : vector<1x4x512xbf16> to vector<4x512xbf16>
    %59 = vector.shape_cast %56 : vector<4x512xbf16> to vector<1x4x512xbf16>
    tpu.vector_store %arg8[%c0_18, %c0_19, %c0_20], %59 {strides = array<i32>} : memref<1x4x512xbf16, #tpu.memory_space<vmem>>, vector<1x4x512xbf16>,
    return
  }
  func.func @transform_0(%arg0: i32, %arg1: i32) -> (i32, i32, i32) {
    %c0_i32 = arith.constant 0 : i32
    %c0_i32_0 = arith.constant 0 : i32
    return %arg0, %c0_i32, %arg1 : i32, i32, i32
  }
  func.func @transform_1(%arg0: i32, %arg1: i32) -> (i32, i32, i32) {
    %c1_i32 = arith.constant 1 : i32
    %0 = arith.addi %arg1, %c1_i32 : i32
    %c2_i32 = arith.constant 2 : i32
    %1 = arith.muli %0, %c2_i32 : i32
    %c0_i32 = arith.constant 0 : i32
    %c0_i32_0 = arith.constant 0 : i32
    return %arg0, %c0_i32, %1 : i32, i32, i32
  }
  func.func @transform_2(%arg0: i32, %arg1: i32) -> (i32, i32) {
    %c0_i32 = arith.constant 0 : i32
    %c0_i32_0 = arith.constant 0 : i32
    %c0_i32_1 = arith.constant 0 : i32
    return %c0_i32, %c0_i32_0 : i32, i32
  }
  func.func @transform_3(%arg0: i32, %arg1: i32) -> (i32, i32) {
    %c0_i32 = arith.constant 0 : i32
    %c0_i32_0 = arith.constant 0 : i32
    %c0_i32_1 = arith.constant 0 : i32
    return %c0_i32, %c0_i32_0 : i32, i32
  }
  func.func @transform_4(%arg0: i32, %arg1: i32) -> (i32, i32) {
    %c0_i32 = arith.constant 0 : i32
    %c0_i32_0 = arith.constant 0 : i32
    %c0_i32_1 = arith.constant 0 : i32
    return %c0_i32, %c0_i32_0 : i32, i32
  }
  func.func @transform_5(%arg0: i32, %arg1: i32) -> (i32, i32) {
    %c0_i32 = arith.constant 0 : i32
    %c0_i32_0 = arith.constant 0 : i32
    %c0_i32_1 = arith.constant 0 : i32
    return %c0_i32, %c0_i32_0 : i32, i32
  }
  func.func @transform_6(%arg0: i32, %arg1: i32) -> (i32, i32, i32) {
    %c0_i32 = arith.constant 0 : i32
    %c0_i32_0 = arith.constant 0 : i32
    return %arg0, %c0_i32, %arg1 : i32, i32, i32
  }
}

module attributes {stable_mosaic.version = 11 : i64} {
  func.func @_conv3_kernel(%arg0: i32, %arg1: i32, %arg2: memref<1x4x512xbf16, #tpu.memory_space<vmem>>, %arg3: memref<1x4x256xbf16, #tpu.memory_space<vmem>>, %arg4: memref<8x108xbf16, #tpu.memory_space<vmem>>, %arg5: memref<1x1xf32, #tpu.memory_space<vmem>>, %arg6: memref<1x1x512xf32, #tpu.memory_space<vmem>>) attributes {dimension_semantics = [#tpu.dimension_semantics<parallel>, #tpu.dimension_semantics<parallel>], iteration_bounds = array<i64: 2, 1>, scalar_prefetch = 0 : i64, scratch_operands = 0 : i64, tpu.core_type = #tpu.core_type<tc>, window_params = [{transform_indices = @transform_0, window_bounds = array<i64: 1, 4, 512>}, {transform_indices = @transform_1, window_bounds = array<i64: 1, 4, 256>}, {pipeline_mode = #tpu.pipeline_mode<synchronous>, transform_indices = @transform_2, window_bounds = array<i64: 8, 108>}, {pipeline_mode = #tpu.pipeline_mode<synchronous>, transform_indices = @transform_3, window_bounds = array<i64: 1, 1>}, {transform_indices = @transform_4, window_bounds = array<i64: 1, 1, 512>}]} {
    %c0 = arith.constant 0 : index
    %c0_0 = arith.constant 0 : index
    %c0_1 = arith.constant 0 : index
    %0 = vector.load %arg2[%c0, %c0_0, %c0_1] : memref<1x4x512xbf16, #tpu.memory_space<vmem>>, vector<1x4x512xbf16>
    %1 = vector.shape_cast %0 : vector<1x4x512xbf16> to vector<4x512xbf16>
    %c0_2 = arith.constant 0 : index
    %c0_3 = arith.constant 0 : index
    %c0_4 = arith.constant 0 : index
    %2 = vector.load %arg3[%c0_2, %c0_3, %c0_4] : memref<1x4x256xbf16, #tpu.memory_space<vmem>>, vector<1x4x256xbf16>
    %3 = vector.shape_cast %2 : vector<1x4x256xbf16> to vector<4x256xbf16>
    %4 = tpu.concatenate %1, %3 in 1 : vector<4x512xbf16>, vector<4x256xbf16> -> vector<4x768xbf16>
    %5 = vector.extract_strided_slice %4 {offsets = [0, 0], sizes = [4, 512], strides = [1, 1]} : vector<4x768xbf16> to vector<4x512xbf16>
    %6 = vector.extract_strided_slice %4 {offsets = [0, 1], sizes = [4, 512], strides = [1, 1]} : vector<4x768xbf16> to vector<4x512xbf16>
    %7 = vector.extract_strided_slice %4 {offsets = [0, 2], sizes = [4, 512], strides = [1, 1]} : vector<4x768xbf16> to vector<4x512xbf16>
    %8 = vector.extract_strided_slice %4 {offsets = [0, 10], sizes = [4, 512], strides = [1, 1]} : vector<4x768xbf16> to vector<4x512xbf16>
    %9 = vector.extract_strided_slice %4 {offsets = [0, 11], sizes = [4, 512], strides = [1, 1]} : vector<4x768xbf16> to vector<4x512xbf16>
    %10 = vector.extract_strided_slice %4 {offsets = [0, 12], sizes = [4, 512], strides = [1, 1]} : vector<4x768xbf16> to vector<4x512xbf16>
    %11 = vector.extract_strided_slice %4 {offsets = [0, 20], sizes = [4, 512], strides = [1, 1]} : vector<4x768xbf16> to vector<4x512xbf16>
    %12 = vector.extract_strided_slice %4 {offsets = [0, 21], sizes = [4, 512], strides = [1, 1]} : vector<4x768xbf16> to vector<4x512xbf16>
    %13 = vector.extract_strided_slice %4 {offsets = [0, 22], sizes = [4, 512], strides = [1, 1]} : vector<4x768xbf16> to vector<4x512xbf16>
    %14 = vector.extract_strided_slice %4 {offsets = [0, 100], sizes = [4, 512], strides = [1, 1]} : vector<4x768xbf16> to vector<4x512xbf16>
    %15 = vector.extract_strided_slice %4 {offsets = [0, 101], sizes = [4, 512], strides = [1, 1]} : vector<4x768xbf16> to vector<4x512xbf16>
    %16 = vector.extract_strided_slice %4 {offsets = [0, 102], sizes = [4, 512], strides = [1, 1]} : vector<4x768xbf16> to vector<4x512xbf16>
    %17 = vector.extract_strided_slice %4 {offsets = [0, 110], sizes = [4, 512], strides = [1, 1]} : vector<4x768xbf16> to vector<4x512xbf16>
    %18 = vector.extract_strided_slice %4 {offsets = [0, 111], sizes = [4, 512], strides = [1, 1]} : vector<4x768xbf16> to vector<4x512xbf16>
    %19 = vector.extract_strided_slice %4 {offsets = [0, 112], sizes = [4, 512], strides = [1, 1]} : vector<4x768xbf16> to vector<4x512xbf16>
    %20 = vector.extract_strided_slice %4 {offsets = [0, 120], sizes = [4, 512], strides = [1, 1]} : vector<4x768xbf16> to vector<4x512xbf16>
    %21 = vector.extract_strided_slice %4 {offsets = [0, 121], sizes = [4, 512], strides = [1, 1]} : vector<4x768xbf16> to vector<4x512xbf16>
    %22 = vector.extract_strided_slice %4 {offsets = [0, 122], sizes = [4, 512], strides = [1, 1]} : vector<4x768xbf16> to vector<4x512xbf16>
    %23 = vector.extract_strided_slice %4 {offsets = [0, 200], sizes = [4, 512], strides = [1, 1]} : vector<4x768xbf16> to vector<4x512xbf16>
    %24 = vector.extract_strided_slice %4 {offsets = [0, 201], sizes = [4, 512], strides = [1, 1]} : vector<4x768xbf16> to vector<4x512xbf16>
    %25 = vector.extract_strided_slice %4 {offsets = [0, 202], sizes = [4, 512], strides = [1, 1]} : vector<4x768xbf16> to vector<4x512xbf16>
    %26 = vector.extract_strided_slice %4 {offsets = [0, 210], sizes = [4, 512], strides = [1, 1]} : vector<4x768xbf16> to vector<4x512xbf16>
    %27 = vector.extract_strided_slice %4 {offsets = [0, 211], sizes = [4, 512], strides = [1, 1]} : vector<4x768xbf16> to vector<4x512xbf16>
    %28 = vector.extract_strided_slice %4 {offsets = [0, 212], sizes = [4, 512], strides = [1, 1]} : vector<4x768xbf16> to vector<4x512xbf16>
    %29 = vector.extract_strided_slice %4 {offsets = [0, 220], sizes = [4, 512], strides = [1, 1]} : vector<4x768xbf16> to vector<4x512xbf16>
    %30 = vector.extract_strided_slice %4 {offsets = [0, 221], sizes = [4, 512], strides = [1, 1]} : vector<4x768xbf16> to vector<4x512xbf16>
    %31 = vector.extract_strided_slice %4 {offsets = [0, 222], sizes = [4, 512], strides = [1, 1]} : vector<4x768xbf16> to vector<4x512xbf16>
    %32 = tpu.concatenate %5, %6, %7, %8, %9, %10, %11, %12, %13, %14, %15, %16, %17, %18, %19, %20 in 0 : vector<4x512xbf16>, vector<4x512xbf16>, vector<4x512xbf16>, vector<4x512xbf16>, vector<4x512xbf16>, vector<4x512xbf16>, vector<4x512xbf16>, vector<4x512xbf16>, vector<4x512xbf16>, vector<4x512xbf16>, vector<4x512xbf16>, vector<4x512xbf16>, vector<4x512xbf16>, vector<4x512xbf16>, vector<4x512xbf16>, vector<4x512xbf16> -> vector<64x512xbf16>
    %33 = tpu.concatenate %21, %22, %23, %24, %25, %26, %27, %28, %29, %30, %31 in 0 : vector<4x512xbf16>, vector<4x512xbf16>, vector<4x512xbf16>, vector<4x512xbf16>, vector<4x512xbf16>, vector<4x512xbf16>, vector<4x512xbf16>, vector<4x512xbf16>, vector<4x512xbf16>, vector<4x512xbf16>, vector<4x512xbf16> -> vector<44x512xbf16>
    %34 = tpu.concatenate %32, %33 in 0 : vector<64x512xbf16>, vector<44x512xbf16> -> vector<108x512xbf16>
    %c0_5 = arith.constant 0 : index
    %c0_6 = arith.constant 0 : index
    %35 = vector.load %arg4[%c0_5, %c0_6] : memref<8x108xbf16, #tpu.memory_space<vmem>>, vector<8x108xbf16>
    %cst = arith.constant dense<0.000000e+00> : vector<8x512xf32>
    %36 = tpu.matmul %35, %34, %cst {dimension_numbers = #tpu.dot_dimension_numbers<[1], [0], [0], [1], [0, 0, 1, 1], [], []>} : vector<8x108xbf16>, vector<108x512xbf16>, vector<8x512xf32> -> vector<8x512xf32>
    %37 = vector.extract_strided_slice %36 {offsets = [0, 0], sizes = [1, 512], strides = [1, 1]} : vector<8x512xf32> to vector<1x512xf32>
    %c0_7 = arith.constant 0 : index
    %c0_8 = arith.constant 0 : index
    %38 = vector.load %arg5[%c0_7, %c0_8] : memref<1x1xf32, #tpu.memory_space<vmem>>, vector<1x1xf32>
    %39 = vector.broadcast %38 : vector<1x1xf32> to vector<1x512xf32>
    %40 = arith.addf %37, %39 : vector<1x512xf32>
    %c0_9 = arith.constant 0 : index
    %c0_10 = arith.constant 0 : index
    %c0_11 = arith.constant 0 : index
    %41 = vector.load %arg6[%c0_9, %c0_10, %c0_11] : memref<1x1x512xf32, #tpu.memory_space<vmem>>, vector<1x1x512xf32>
    %42 = vector.shape_cast %41 : vector<1x1x512xf32> to vector<1x512xf32>
    %43 = vector.shape_cast %40 : vector<1x512xf32> to vector<1x1x512xf32>
    tpu.vector_store %arg6[%c0_9, %c0_10, %c0_11], %43 {strides = array<i32>} : memref<1x1x512xf32, #tpu.memory_space<vmem>>, vector<1x1x512xf32>,
    return
  }
  func.func @transform_0(%arg0: i32, %arg1: i32) -> (i32, i32, i32) {
    %c0_i32 = arith.constant 0 : i32
    %c0_i32_0 = arith.constant 0 : i32
    return %arg0, %c0_i32, %arg1 : i32, i32, i32
  }
  func.func @transform_1(%arg0: i32, %arg1: i32) -> (i32, i32, i32) {
    %c1_i32 = arith.constant 1 : i32
    %0 = arith.addi %arg1, %c1_i32 : i32
    %c2_i32 = arith.constant 2 : i32
    %1 = arith.muli %0, %c2_i32 : i32
    %c0_i32 = arith.constant 0 : i32
    %c0_i32_0 = arith.constant 0 : i32
    return %arg0, %c0_i32, %1 : i32, i32, i32
  }
  func.func @transform_2(%arg0: i32, %arg1: i32) -> (i32, i32) {
    %c0_i32 = arith.constant 0 : i32
    %c0_i32_0 = arith.constant 0 : i32
    %c0_i32_1 = arith.constant 0 : i32
    return %c0_i32, %c0_i32_0 : i32, i32
  }
  func.func @transform_3(%arg0: i32, %arg1: i32) -> (i32, i32) {
    %c0_i32 = arith.constant 0 : i32
    %c0_i32_0 = arith.constant 0 : i32
    %c0_i32_1 = arith.constant 0 : i32
    return %c0_i32, %c0_i32_0 : i32, i32
  }
  func.func @transform_4(%arg0: i32, %arg1: i32) -> (i32, i32, i32) {
    %c0_i32 = arith.constant 0 : i32
    %c0_i32_0 = arith.constant 0 : i32
    return %arg0, %c0_i32, %arg1 : i32, i32, i32
  }
}

</mosaic_0001>

<bundles_post_ra>
// kernel: vrm_forward.3
= control target key start
LH: loop header
LB: loop body
LE: loop exit
PB: predicated region body
PF: predicated region fallthrough
CT: control target
= control target key end

     0   :  { %s2529_s0 = inlined_call_operand.hbm [shape: bf16[2,4,800], index: 0, kind: input, shape index: {}, may-alias: {0,1}]   ;;  %s2530_s1 = inlined_call_operand.hbm [shape: bf16[2,4,800], index: 1, kind: input, shape index: {}, may-alias: {0,1}]   ;;  %s2531_s2 = inlined_call_operand.hbm [shape: bf16[8,108], index: 2, kind: input, shape index: {}]   ;;  %s2532_s3 = inlined_call_operand.<no memory space> [shape: f32[1,1], index: 3, kind: input, shape index: {}]   ;;  %s2533_s4 = inlined_call_operand.hbm [shape: f32[2,1,512], index: 4, kind: output, shape index: {}]  }
   0x1   :  { %2543 = sst [smem:[#allocation19_spill]] %s2529_s0  ;;  %v9_v0 = vstv %s2532_s3 }
   0x2   :  { %2544 = sst [smem:[#allocation20_spill]] %s2531_s2  ;;  %10 = vst [vmem:[#allocation2] sm:$0x1] %v9_v0 }
   0x3   :  { %11 = vsyncpa [#allocation4], 0 }
   0x4   :  { %13 = vsyncpa [#allocation4 + $0x1], 0 }
   0x5   :  { %14 = vsyncpa [#allocation7], 0 }
   0x6   :  { %16 = vsyncpa [#allocation7 + $0x1], 0 }
   0x7   :  { %17 = vsyncpa [#allocation5], 0 }
   0x8   :  { %19 = vsyncpa [#allocation5 + $0x1], 0  ;;  %s1633_s17 = smov 0   ;;  %s1635_s18 = smov 0  }
   0x9   :  { %s1637_s19 = smov 0   ;;  %s1639_s20 = smov 0  }
   0xa   :  { %s1641_s21 = smov 0   ;;  %s1643_s22 = smov 0  }
   0xb LB: > { %s1664_s3 = sadd.s32 4294967295, %s1573_s22   ;;  %s1262_s23 = sadd.s32 4294967294, %s1573_s22   ;;  %s1573_s22 = sphi %s1643_s22, %s25_s22   ;;  %s1569_s21 = sphi %s1641_s21, %s2581_s21   ;;  %s1565_s20 = sphi %s1639_s20, %s2580_s20   ;;  %s1561_s19 = sphi %s1637_s19, %s2579_s19   ;;  %s1557_s18 = sphi %s1635_s18, %s2578_s18   ;;  %s1553_s17 = sphi %s1633_s17, %s2577_s17  }
   0xc   : > { %p2535_p0 = scmp.ne.s32.totalorder %s1561_s19, %s1557_s18  ;;  %p59_p1 = scmp.ne.s32.totalorder %s1557_s18, %s1553_s17 }
   0xd   : > { %p2534_p2 = scmp.eq.s32.totalorder %s1664_s3, 0  ;;  %p159_p3 = scmp.eq.s32.totalorder %s1664_s3, 1 }
   0xe   : > { %p165_p4 = scmp.eq.s32.totalorder %s1262_s23, 1  ;;  %p1263_p5 = scmp.ge.s32.totalorder %s1573_s22, 1 }
   0xf   : > { %p1676_p6 = por %p2534_p2, %p59_p1  ;;  %p1683_p7 = por %p159_p3, %p2535_p0 }
  0x10   : > { %p1687_p8 = por %p165_p4, %p59_p1  ;;  %p172_p9 = scmp.lt.s32.totalorder %s1573_s22, 3 }
  0x11   : > { %s2545_s24 = scalar_select %p1676_p6, 1, 0 }
  0x12   : > { %s2546_s25 = scalar_select %p1683_p7, 1, 0 }
  0x13   : > { %s2547_s26 = scalar_select %p1687_p8, 1, 0 }
  0x14   : > { %p1692_p10 = pnand %p1263_p5, %p172_p9  ;;  %s1575_s28 = smov [#allocation8]  }
  0x15   : > { %s185_s29 = sshll.u32 %s1575_s28, 4  ;;  %s46_s30 = sadd.s32 1, %s1561_s19  ;;  %s186_s29 = int_to_ptr.vmem [resolvable:$true] %s185_s29 }
  0x16   : > { %s2548_s27 = scalar_select %p1692_p10, 1, 0 }
  0x17   : > { %p1297_p12 = pneg %p1692_p10  ;;  %s37_s6 = sadd.s32 1, %s1569_s21 }
  0x18   : > { %p1707_p1 = scmp.ge.s32.totalorder %s37_s6, 2  ;;  %s2551_s2 = sld [smem:[#allocation20_spill]] }
  0x19   : > { %p1702_p13 = pnand %p1297_p12, %p2534_p2 }
  0x1a   : > { %s2550_s7 = scalar_select %p1707_p1, 1, 0 }
  0x1b   : > { %p1396_p9 = pneg %p1702_p13 }
  0x1e   : > { %s1394_s10 = scalar_lea.hbm %s2551_s2, 64 }
  0x1f   : > { %p1395_p5 = scmp.ne.s32.totalorder %s2551_s2, %s1394_s10  ;;  %p1401_p2 = scmp.lt.u32.totalorder %s1394_s10, %s2551_s2 }
  0x21   : > { %p1397_p12 = pnand %p1396_p9, %p1395_p5 }
  0x23   : > { %p1398_p11 = pneg %p1397_p12 }
  0x25   : > { %p1403_p0 = pnand %p1401_p2, %p1398_p11 }
  0x27   : > { %1406 = shalt.err (!%p1403_p0)
}
  0x28   : > { %s1407_s15 = scalar_lea.vmem %s186_s29, 64  ;;  %p1415_p7 = scmp.lt.s32.totalorder %s186_s29, %s186_s29 }
  0x29   : > { %p1408_p4 = scmp.ne.s32.totalorder %s186_s29, %s1407_s15  ;;  %p1416_p6 = scmp.lt.s32.totalorder %s1407_s15, %s1407_s15 }
  0x2b   : > { %p1410_p3 = pnand %p1408_p4, %p1396_p9  ;;  %p1417_p10 = por %p1416_p6, %p1415_p7 }
  0x2d   : > { %p1411_p8 = pneg %p1410_p3 }
  0x2f   : > { %p1418_p1 = pnand %p1417_p10, %p1411_p8 }
  0x31   : > { %1421 = shalt.err (!%p1418_p1)
}
  0x32   : > { %1300 = dma.hbm_to_vmem [thread:$0]  (!%p1702_p13), %s2551_s2, 64, %s186_s29, [#allocation7]  }
  0x33   : > { %p2552_p0 = scmp.ne.s32.totalorder %s2550_s7, 0  ;;  %p2553_p2 = scmp.ne.s32.totalorder %s1561_s19, %s1557_s18 }
  0x34   : > { %p2554_p6 = scmp.eq.s32.totalorder %s1573_s22, 0  ;;  %s1739_s28 = sand.u32 1, %s1561_s19  }
  0x35   : > { %s2583_s6 = smov (%p2552_p0, %s37_s6), 0  ;;  %s1266_s8 = sshll.u32 %s1739_s28, 3 }
  0x36   : > { %p55_p7 = por %p2554_p6, %p2553_p2  ;;  %s41_s5 = ssub.s32 %s1569_s21, %s2583_s6 }
  0x37   : > { %p44_p8 = scmp.eq.s32.totalorder %s41_s5, 0  ;;  %s1286_s9 = smul.u32 224, %s1569_s21 }
  0x38   : > { %s2555_s0 = sld [smem:[#allocation19_spill]]  ;;  %s203_s12 = scalar_lea.vmem [#allocation3], %s1266_s8 }
  0x39   : > { %s1748_s10 = scalar_select %p44_p8, %s1561_s19, %s46_s30  }
  0x3a   : > { %s219_s13 = sshll.u32 %s203_s12, 4  ;;  %p2556_p10 = scmp.lt.s32.totalorder %s1573_s22, 2  ;;  %s1757_s13 = int_to_ptr.vmem [resolvable:$true] %s219_s13 }
  0x3b   : > { %s1268_s15 = sshll.u32 %s1739_s28, 2  ;;  %s200_s16 = scalar_lea.sflag [#allocation4], %s1739_s28 }
  0x3c   : > { %p1761_p11 = pnand %p2556_p10, %p55_p7 }
  0x3e   : > { %s1755_s11 = scalar_lea.hbm %s2555_s0, %s1286_s9  ;;  %p1424_p1 = pneg %p1761_p11 }
  0x3f   : > { %s1422_s23 = scalar_lea.hbm %s1755_s11, 128  ;;  %s1427_s29 = scalar_lea.hbm %s2555_s0, 448 }
  0x40   : > { %p1423_p13 = scmp.ne.s32.totalorder %s1755_s11, %s1422_s23  ;;  %p1428_p5 = scmp.lt.u32.totalorder %s1755_s11, %s2555_s0 }
  0x41   : > { %p1429_p9 = scmp.lt.u32.totalorder %s1427_s29, %s1422_s23  ;;  %p1431_p0 = scmp.lt.u32.totalorder %s1422_s23, %s1755_s11 }
  0x42   : > { %p1425_p3 = pnand %p1424_p1, %p1423_p13 }
  0x43   : > { %p1430_p12 = por %p1429_p9, %p1428_p5 }
  0x44   : > { %p1426_p4 = pneg %p1425_p3 }
  0x45   : > { %p1432_p2 = por %p1431_p0, %p1430_p12 }
  0x47   : > { %p1433_p6 = pnand %p1432_p2, %p1426_p4 }
  0x49   : > { %1436 = shalt.err (!%p1433_p6)
}
  0x4a   : > { %s1437_s30 = scalar_lea.vmem %s1757_s13, 128  ;;  %s1576_s5 = smov [#allocation3]  }
  0x4b   : > { %p1438_p7 = scmp.ne.s32.totalorder %s1757_s13, %s1437_s30  ;;  %s1442_s8 = sshll.u32 %s1576_s5, 4  ;;  %s1443_s8 = int_to_ptr.vmem [resolvable:$false] %s1442_s8 }
  0x4c   : > { %s1444_s7 = scalar_lea.vmem %s1443_s8, 256  ;;  %p1445_p13 = scmp.lt.s32.totalorder %s1757_s13, %s1443_s8 }
  0x4d   : > { %p1440_p8 = pnand %p1438_p7, %p1424_p1  ;;  %p1446_p3 = scmp.lt.s32.totalorder %s1444_s7, %s1437_s30 }
  0x4f   : > { %p1441_p10 = pneg %p1440_p8  ;;  %p1447_p5 = por %p1446_p3, %p1445_p13 }
  0x51   : > { %p1448_p9 = pnand %p1447_p5, %p1441_p10 }
  0x53   : > { %1451 = shalt.err (!%p1448_p9)
}
  0x54   : > { %1304 = dma.hbm_to_vmem [thread:$0]  (!%p1761_p11), %s1755_s11, 128, %s1757_s13, %s200_s16  }
  0x55   : > { %s1183_s12 = scalar_lea.hbm %s2530_s1, %s1286_s9  ;;  %s230_s30 = scalar_lea.vmem [#allocation6], %s1268_s15 }
  0x56   : > { %s1798_s5 = scalar_lea.hbm %s1183_s12, 128  ;;  %s248_s8 = sshll.u32 %s230_s30, 4  ;;  %s249_s8 = int_to_ptr.vmem [resolvable:$true] %s248_s8 }
  0x57   : > { %s2558_s7 = sand.u32 1, %s1573_s22   ;;  %s1482_s2 = scalar_lea.hbm %s1183_s12, 192 }
  0x58   : > { %s227_s0 = scalar_lea.sflag [#allocation7], %s2558_s7  ;;  %p1453_p4 = scmp.ne.s32.totalorder %s1798_s5, %s1482_s2 }
  0x59   : > { %s1457_s9 = scalar_lea.hbm %s2530_s1, 448  ;;  %p1458_p2 = scmp.lt.u32.totalorder %s1798_s5, %s2530_s1 }
  0x5a   : > { %p1455_p12 = pnand %p1453_p4, %p1424_p1  ;;  %p1459_p6 = scmp.lt.u32.totalorder %s1457_s9, %s1482_s2 }
  0x5b   : > { %p1461_p8 = scmp.lt.u32.totalorder %s1482_s2, %s1798_s5 }
  0x5c   : > { %p1456_p0 = pneg %p1455_p12  ;;  %p1460_p7 = por %p1459_p6, %p1458_p2 }
  0x5e   : > { %p1462_p10 = por %p1461_p8, %p1460_p7 }
  0x60   : > { %p1463_p13 = pnand %p1462_p10, %p1456_p0 }
  0x62   : > { %1466 = shalt.err (!%p1463_p13)
}
  0x63   : > { %s1467_s15 = scalar_lea.vmem %s249_s8, 64  ;;  %s1577_s23 = smov [#allocation6]  }
  0x64   : > { %p1468_p3 = scmp.ne.s32.totalorder %s249_s8, %s1467_s15  ;;  %s1472_s29 = sshll.u32 %s1577_s23, 4  ;;  %s1473_s29 = int_to_ptr.vmem [resolvable:$false] %s1472_s29 }
  0x65   : > { %s1474_s12 = scalar_lea.vmem %s1473_s29, 128  ;;  %p1475_p4 = scmp.lt.s32.totalorder %s249_s8, %s1473_s29 }
  0x66   : > { %p1470_p5 = pnand %p1468_p3, %p1424_p1  ;;  %p1476_p12 = scmp.lt.s32.totalorder %s1474_s12, %s1467_s15 }
  0x68   : > { %p1471_p9 = pneg %p1470_p5  ;;  %p1477_p2 = por %p1476_p12, %p1475_p4 }
  0x6a   : > { %p1478_p6 = pnand %p1477_p2, %p1471_p9 }
  0x6c   : > { %1481 = shalt.err (!%p1478_p6)
}
  0x6d   : > { %1307 = dma.hbm_to_vmem [thread:$0]  (!%p1761_p11), %s1798_s5, 64, %s249_s8, %s227_s0  }
  0x6e   : > { %p2559_p0 = scmp.ne.s32.totalorder %s2548_s27, 0 }
  0x70   : > { %257 = sbr.rel (%p2559_p0) target bundleno = 749 (0x2ed), region = 36 }
  0x77   : > { %s1825_s2 = sand.u32 1, %s1557_s18   ;;  %p2560_p1 = scmp.ne.s32.totalorder %s2545_s24, 0 }
  0x78   : > { %s1271_s30 = sshll.u32 %s1825_s2, 3  ;;  %s260_s7 = scalar_lea.sflag [#allocation4], %s1825_s2 }
  0x79   : > { %s263_s11 = scalar_lea.vmem [#allocation3], %s1271_s30 }
  0x7a   : > { %1536 = dma.done.wait (%p2560_p1), %s260_s7, 128  }
  0x7b   : > { %1538 = vsyncadd (%p2560_p1), %s260_s7, 4294967168  ;;  %s268_s0 = sand.u32 1, %s1664_s3   ;;  %s1272_s27 = sshll.u32 %s1825_s2, 2 }
  0x7c   : > { %s269_s14 = scalar_lea.sflag [#allocation7], %s268_s0  ;;  %s272_s5 = scalar_lea.vmem [#allocation6], %s1272_s27 }
  0x7d   : > { %1540 = dma.done.wait (%p2560_p1), %s269_s14, 64  }
  0x7e   : > { %1542 = vsyncadd (%p2560_p1), %s269_s14, 4294967232  ;;  %p2561_p11 = scmp.eq.s32.totalorder %s1664_s3, 0 }
  0x80   : > { %1544 = dma.done.wait (%p2561_p11), [#allocation7], 64   ;;  %p2562_p7 = pmov %p2561_p11 }
  0x81   : > { %v2539_v1 = vlaneseq  ;;  %v1578_v2 = vmov 1983009808   ;;  %v1849_v7 = vld.sshfl [vmem:[%s272_s5] sm:$0x33 pattern:$0x76325410] }
  0x82   : > { %1546 = vsyncadd (%p2562_p7), [#allocation7], 4294967232  ;;  %v325_v3 = vunpack.c.l.s4 %v1578_v2  ;;  %v320_v8 = vld [vmem:[%s263_s11] sm:$0xff]  ;;  %v1852_v9 = vrot.slane %v1849_v7, 6  ;;  %s1579_s3 = smov 127   ;;  %s1580_s24 = smov 49   ;;  %v348_v18 = vcombine.high %v1849_v7, %v1849_v7 }
  0x83   : > { %v1846_v4 = vshrl.u32 %v2539_v1, 7  ;;  %v323_v11 = vcombine.high %v320_v8, %v320_v8  ;;  %v1891_v21 = vrot.slane %v1849_v7, 4  ;;  %s1581_s8 = smov 48   ;;  %v1903_v24 = vrot.slane %v1849_v7, 2  ;;  %s1582_s13 = smov 47  }
  0x84   : > { %v326_v5 = vunpack.c.0.s8 %v325_v3  ;;  %362 = vrot.lane.b32.xlu1 %v1852_v9, %s1579_s3  ;;  %v736_v26 = vrot.slane %v348_v18, 2  ;;  %s1583_s9 = smov 39   ;;  %v767_v27 = vrot.slane %v348_v18, 6  ;;  %s1584_s16 = smov 38   ;;  %vm364_vm0 = vcmask 1039360  }
  0x85   : > { %2563 = vst [vmem:[#allocation14_spill] sm:$0xff] %v1846_v4  ;;  %s1585_s28 = smov 37   ;;  %s1586_s15 = smov 28   ;;  %vm589_vm1 = vcmask 1041408   ;;  %vm731_vm2 = vcmask 400384   ;;  %vm747_vm3 = vcmask 392192  }
  0x86   : > { %v329_v6 = vsub.s32 %v326_v5, %v1846_v4  ;;  %s1587_s23 = smov 29   ;;  %s1588_s29 = smov 27   ;;  %vm602_vm4 = vcmask 1043456   ;;  %vm611_vm5 = vcmask 1045504   ;;  %vm762_vm6 = vcmask 384000  }
  0x87   : > { %s1589_s12 = smov 126   ;;  %s1590_s30 = smov 118   ;;  %vm778_vm7 = vcmask 318464   ;;  %vm793_vm8 = vcmask 310272   ;;  %vm808_vm9 = vcmask 302080   ;;  %vm384_vm10 = vcmask 1031168  }
  0x88   : > { %v1854_v10 = vrot.slane %v320_v8, %v329_v6  ;;  %v1860_v13 = vrot.slane %v323_v11, %v329_v6  ;;  %s1591_s7 = smov 117   ;;  %s1592_s11 = smov 116   ;;  %vm404_vm11 = vcmask 965632   ;;  %vm823_vm12 = vcmask 236544  }
  0x89   : > { %s1593_s0 = smov 108   ;;  %s1594_s14 = smov 107   ;;  %vm509_vm13 = vcmask 220160   ;;  %vm494_vm14 = vcmask 228352   ;;  %vm434_vm15 = vcmask 949248  }
  0x8a   : > { %v1858_v12 = vrot.slane %v1854_v10, 6  ;;  %v1864_v14 = vcombine.high %v1854_v10, %v1854_v10  ;;  %v1872_v16 = vcombine.high %v1860_v13, %v1860_v13  ;;  %v1877_v17 = vrot.slane %v1860_v13, 6  ;;  %s1595_s5 = smov 106   ;;  %p2574_p10 = scmp.ne.s32.totalorder %s2546_s25, 0 }
  0x8b   : > { %v1884_v19 = vrot.slane %v1860_v13, 4  ;;  %v1895_v22 = vrot.slane %v1860_v13, 2  ;;  %v1954_v28 = vrot.slane %v1854_v10, 4  ;;  %v1960_v29 = vrot.slane %v1854_v10, 2 }
  0x8c   : > { %354 = vrot.lane.b32.xlu0 %v1858_v12, %s1579_s3  ;;  %v1868_v15 = vrot.slane %v1864_v14, 6  ;;  %721 = vrot.lane.b32.xlu1 %v1864_v14, %s1580_s24  ;;  %v1887_v20 = vrot.slane %v1872_v16, 6  ;;  %v1899_v23 = vrot.slane %v1864_v14, 2  ;;  %v1907_v25 = vrot.slane %v1872_v16, 2 }
  0x90   : > { %356 = vrot.lane.b32.xlu0 %v1868_v15, %s1579_s3  ;;  %725 = vrot.lane.b32.xlu1 %v1872_v16, %s1580_s24 }
  0x94   : > { %358 = vrot.lane.b32.xlu0 %v1877_v17, %s1579_s3  ;;  %729 = vrot.lane.b32.xlu1 %v348_v18, %s1580_s24 }
  0x98   : > { %723 = vrot.lane.b32.xlu0 %v1884_v19, %s1580_s24  ;;  %360 = vrot.lane.b32.xlu1 %v1887_v20, %s1579_s3  ;;  %s1596_s3 = smov 26  }
  0x9c   : > { %727 = vrot.lane.b32.xlu0 %v1891_v21, %s1580_s24  ;;  %739 = vrot.lane.b32.xlu1 %v1895_v22, %s1581_s8  ;;  %s1597_s24 = smov 18  }
  0xa0   : > { %737 = vrot.lane.b32.xlu0 %v1899_v23, %s1581_s8  ;;  %743 = vrot.lane.b32.xlu1 %v1903_v24, %s1581_s8 }
  0xa4   : > { %741 = vrot.lane.b32.xlu0 %v1907_v25, %s1581_s8  ;;  %752 = vrot.lane.b32.xlu1 %v1864_v14, %s1582_s13 }
  0xa8   : > { %745 = vrot.lane.b32.xlu0 %v736_v26, %s1581_s8  ;;  %756 = vrot.lane.b32.xlu1 %v1872_v16, %s1582_s13  ;;  %s1598_s8 = smov 17  }
  0xac   : > { %754 = vrot.lane.b32.xlu0 %v1860_v13, %s1582_s13  ;;  %760 = vrot.lane.b32.xlu1 %v348_v18, %s1582_s13 }
  0xb0   : > { %758 = vrot.lane.b32.xlu0 %v1849_v7, %s1582_s13  ;;  %770 = vrot.lane.b32.xlu1 %v1877_v17, %s1583_s9  ;;  %s1599_s13 = smov 16  }
  0xb4   : > { %768 = vrot.lane.b32.xlu0 %v1868_v15, %s1583_s9  ;;  %774 = vrot.lane.b32.xlu1 %v1852_v9, %s1583_s9 }
  0xb8   : > { %772 = vrot.lane.b32.xlu0 %v1887_v20, %s1583_s9  ;;  %783 = vrot.lane.b32.xlu1 %v1864_v14, %s1584_s16 }
  0xbc   : > { %776 = vrot.lane.b32.xlu0 %v767_v27, %s1583_s9  ;;  %787 = vrot.lane.b32.xlu1 %v1872_v16, %s1584_s16  ;;  %s1600_s9 = smov 8  }
  0xc0   : > { %785 = vrot.lane.b32.xlu0 %v1884_v19, %s1584_s16  ;;  %791 = vrot.lane.b32.xlu1 %v348_v18, %s1584_s16 }
  0xc4   : > { %789 = vrot.lane.b32.xlu0 %v1891_v21, %s1584_s16  ;;  %800 = vrot.lane.b32.xlu1 %v1895_v22, %s1585_s28  ;;  %s1601_s16 = smov 7  }
  0xc8   : > { %798 = vrot.lane.b32.xlu0 %v1899_v23, %s1585_s28  ;;  %804 = vrot.lane.b32.xlu1 %v1903_v24, %s1585_s28 }
  0xcc   : > { %802 = vrot.lane.b32.xlu0 %v1907_v25, %s1585_s28  ;;  %486 = vrot.lane.b32.xlu1 %v1868_v15, %s1586_s15 }
  0xd0   : > { %806 = vrot.lane.b32.xlu0 %v736_v26, %s1585_s28  ;;  %490 = vrot.lane.b32.xlu1 %v1887_v20, %s1586_s15  ;;  %s1285_s28 = sshll.u32 %s1565_s20, 6 }
  0xd4   : > { %488 = vrot.lane.b32.xlu0 %v1877_v17, %s1586_s15  ;;  %813 = vrot.lane.b32.xlu1 %v1864_v14, %s1587_s23 }
  0xd8   : > { %492 = vrot.lane.b32.xlu0 %v1852_v9, %s1586_s15  ;;  %817 = vrot.lane.b32.xlu1 %v1872_v16, %s1587_s23 }
  0xdc   : > { %815 = vrot.lane.b32.xlu0 %v1860_v13, %s1587_s23  ;;  %821 = vrot.lane.b32.xlu1 %v348_v18, %s1587_s23 }
  0xe0   : > { %819 = vrot.lane.b32.xlu0 %v1849_v7, %s1587_s23  ;;  %501 = vrot.lane.b32.xlu1 %v1864_v14, %s1588_s29 }
  0xe4   : > { %828 = vrot.lane.b32.xlu0 %v767_v27, %s1586_s15  ;;  %505 = vrot.lane.b32.xlu1 %v1872_v16, %s1588_s29 }
  0xe8   : > { %503 = vrot.lane.b32.xlu0 %v1884_v19, %s1588_s29  ;;  %831 = vrot.lane.b32.xlu1 %v348_v18, %s1588_s29 }
  0xec   : > { %507 = vrot.lane.b32.xlu0 %v1891_v21, %s1588_s29  ;;  %378 = vrot.lane.b32.xlu1 %v1884_v19, %s1589_s12 }
  0xf0   : > { %376 = vrot.lane.b32.xlu0 %v1864_v14, %s1589_s12  ;;  %382 = vrot.lane.b32.xlu1 %v1891_v21, %s1589_s12 }
  0xf4   : > { %380 = vrot.lane.b32.xlu0 %v1872_v16, %s1589_s12  ;;  %396 = vrot.lane.b32.xlu1 %v1899_v23, %s1590_s30 }
  0xf6   : > { %v1962_v30 = vpop.permute.xlu1 %362 }
  0xf8   : > { %374 = vrot.lane.b32.xlu0 %v1954_v28, %s1589_s12  ;;  %400 = vrot.lane.b32.xlu1 %v1907_v25, %s1590_s30 }
  0xfc   : > { %398 = vrot.lane.b32.xlu0 %v1895_v22, %s1590_s30  ;;  %394 = vrot.lane.b32.xlu1 %v1960_v29, %s1590_s30 }
  0xfe   : > { %v1965_v31 = vpop.permute.xlu0 %354  ;;  %v1968_v32 = vpop.permute.xlu1 %721 }
 0x100   : > { %402 = vrot.lane.b32.xlu0 %v1903_v24, %s1590_s30  ;;  %413 = vrot.lane.b32.xlu1 %v1860_v13, %s1591_s7  ;;  %s2480_s30 = scalar_lea.hbm %s2533_s4, %s1285_s28 }
 0x102   : > { %v1971_v33 = vpop.permute.xlu0 %356  ;;  %v1974_v34 = vpop.permute.xlu1 %725 }
 0x104   : > { %411 = vrot.lane.b32.xlu0 %v1864_v14, %s1591_s7  ;;  %417 = vrot.lane.b32.xlu1 %v1849_v7, %s1591_s7 }
 0x106   : > { %v1977_v35 = vpop.permute.xlu0 %358  ;;  %v1980_v36 = vpop.permute.xlu1 %729 }
 0x108   : > { %415 = vrot.lane.b32.xlu0 %v1872_v16, %s1591_s7  ;;  %428 = vrot.lane.b32.xlu1 %v1877_v17, %s1592_s11 }
 0x10a   : > { %v1983_v37 = vpop.permute.xlu0 %723  ;;  %v1987_v38 = vpop.permute.xlu1 %360 }
 0x10b   : > { %v367_v4 = vsel %vm364_vm0, %v1977_v35, %v1987_v38 }
 0x10c   : > { %426 = vrot.lane.b32.xlu0 %v1868_v15, %s1592_s11  ;;  %432 = vrot.lane.b32.xlu1 %v1852_v9, %s1592_s11 }
 0x10e   : > { %v1989_v39 = vpop.permute.xlu0 %727  ;;  %v1993_v40 = vpop.permute.xlu1 %739 }
 0x110   : > { %430 = vrot.lane.b32.xlu0 %v1887_v20, %s1592_s11  ;;  %424 = vrot.lane.b32.xlu1 %v1858_v12, %s1592_s11 }
 0x112   : > { %v1995_v41 = vpop.permute.xlu0 %737  ;;  %v1999_v42 = vpop.permute.xlu1 %743 }
 0x114   : > { %409 = vrot.lane.b32.xlu0 %v1854_v10, %s1591_s7  ;;  %443 = vrot.lane.b32.xlu1 %v1884_v19, %s1593_s0  ;;  %s1125_s7 = scalar_lea.sflag [#allocation5], %s1825_s2 }
 0x116   : > { %v2001_v43 = vpop.permute.xlu0 %741  ;;  %v2005_v44 = vpop.permute.xlu1 %752 }
 0x118   : > { %441 = vrot.lane.b32.xlu0 %v1864_v14, %s1593_s0  ;;  %447 = vrot.lane.b32.xlu1 %v1891_v21, %s1593_s0 }
 0x11a   : > { %v2007_v45 = vpop.permute.xlu0 %745  ;;  %v2011_v46 = vpop.permute.xlu1 %756 }
 0x11c   : > { %445 = vrot.lane.b32.xlu0 %v1872_v16, %s1593_s0  ;;  %456 = vrot.lane.b32.xlu1 %v1899_v23, %s1594_s14 }
 0x11e   : > { %v2013_v47 = vpop.permute.xlu0 %754  ;;  %v2017_v48 = vpop.permute.xlu1 %760 }
 0x120   : > { %439 = vrot.lane.b32.xlu0 %v1954_v28, %s1593_s0  ;;  %460 = vrot.lane.b32.xlu1 %v1907_v25, %s1594_s14 }
 0x122   : > { %v2019_v49 = vpop.permute.xlu0 %758  ;;  %v2023_v50 = vpop.permute.xlu1 %770 }
 0x124   : > { %458 = vrot.lane.b32.xlu0 %v1895_v22, %s1594_s14  ;;  %454 = vrot.lane.b32.xlu1 %v1960_v29, %s1594_s14 }
 0x126   : > { %v2025_v51 = vpop.permute.xlu0 %768  ;;  %v2029_v52 = vpop.permute.xlu1 %774 }
 0x128   : > { %462 = vrot.lane.b32.xlu0 %v1903_v24, %s1594_s14  ;;  %473 = vrot.lane.b32.xlu1 %v1860_v13, %s1595_s5 }
 0x12a   : > { %v2031_v53 = vpop.permute.xlu0 %772  ;;  %v2035_v54 = vpop.permute.xlu1 %783 }
 0x12c   : > { %471 = vrot.lane.b32.xlu0 %v1864_v14, %s1595_s5  ;;  %477 = vrot.lane.b32.xlu1 %v1849_v7, %s1595_s5 }
 0x12e   : > { %v2037_v55 = vpop.permute.xlu0 %776  ;;  %v2041_v56 = vpop.permute.xlu1 %787 }
 0x130   : > { %475 = vrot.lane.b32.xlu0 %v1872_v16, %s1595_s5  ;;  %484 = vrot.lane.b32.xlu1 %v1858_v12, %s1586_s15  ;;  %s305_s15 = scalar_lea.vmem [#allocation9], %s1272_s27  ;;  %s1604_s27 = smov [#allocation9]  }
 0x131   : > { %s1141_s23 = sshll.u32 %s305_s15, 4  ;;  %s1487_s11 = sshll.u32 %s1604_s27, 4  ;;  %s2482_s23 = int_to_ptr.vmem [resolvable:$true] %s1141_s23  ;;  %s1488_s11 = int_to_ptr.vmem [resolvable:$false] %s1487_s11 }
 0x132   : > { %v2043_v57 = vpop.permute.xlu0 %785  ;;  %v2048_v58 = vpop.permute.xlu1 %791  ;;  %s1483_s20 = scalar_lea.vmem %s2482_s23, 64  ;;  %s1489_s0 = scalar_lea.vmem %s1488_s11, 128 }
 0x133   : > { %p1484_p8 = scmp.ne.s32.totalorder %s2482_s23, %s1483_s20  ;;  %p1490_p5 = scmp.lt.s32.totalorder %s2482_s23, %s1488_s11 }
 0x134   : > { %469 = vrot.lane.b32.xlu0 %v1854_v10, %s1595_s5  ;;  %516 = vrot.lane.b32.xlu1 %v1899_v23, %s1596_s3  ;;  %p1491_p9 = scmp.lt.s32.totalorder %s1489_s0, %s1483_s20 }
 0x135   : > { %p1485_p13 = pnand %p1484_p8, %p2574_p10 }
 0x136   : > { %v2050_v59 = vpop.permute.xlu0 %789  ;;  %v2055_v60 = vpop.permute.xlu1 %800  ;;  %p1492_p4 = por %p1491_p9, %p1490_p5 }
 0x137   : > { %p1486_p3 = pneg %p1485_p13 }
 0x138   : > { %499 = vrot.lane.b32.xlu0 %v1954_v28, %s1588_s29  ;;  %520 = vrot.lane.b32.xlu1 %v1907_v25, %s1596_s3 }
 0x139   : > { %p1493_p12 = pnand %p1492_p4, %p1486_p3 }
 0x13a   : > { %v2057_v61 = vpop.permute.xlu0 %798  ;;  %v2061_v62 = vpop.permute.xlu1 %804 }
 0x13c   : > { %518 = vrot.lane.b32.xlu0 %v1895_v22, %s1596_s3  ;;  %514 = vrot.lane.b32.xlu1 %v1960_v29, %s1596_s3 }
 0x13e   : > { %v2063_v63 = vpop.permute.xlu0 %802  ;;  %v2067_v0 = vpop.permute.xlu1 %486 }
 0x140   : > { %522 = vrot.lane.b32.xlu0 %v1903_v24, %s1596_s3  ;;  %533 = vrot.lane.b32.xlu1 %v1860_v13, %s1597_s24 }
 0x142   : > { %v2069_v2 = vpop.permute.xlu0 %806  ;;  %v2073_v3 = vpop.permute.xlu1 %490 }
 0x143   : > { %2564 = vst [vmem:[#allocation15_spill] sm:$0xff] %v2073_v3 }
 0x144   : > { %531 = vrot.lane.b32.xlu0 %v1864_v14, %s1597_s24  ;;  %537 = vrot.lane.b32.xlu1 %v1849_v7, %s1597_s24 }
 0x146   : > { %v2075_v5 = vpop.permute.xlu0 %488  ;;  %v2079_v6 = vpop.permute.xlu1 %813 }
 0x148   : > { %535 = vrot.lane.b32.xlu0 %v1872_v16, %s1597_s24  ;;  %548 = vrot.lane.b32.xlu1 %v1877_v17, %s1598_s8 }
 0x14a   : > { %v2081_v8 = vpop.permute.xlu0 %492  ;;  %v2085_v11 = vpop.permute.xlu1 %817 }
 0x14c   : > { %546 = vrot.lane.b32.xlu0 %v1868_v15, %s1598_s8  ;;  %552 = vrot.lane.b32.xlu1 %v1852_v9, %s1598_s8 }
 0x14e   : > { %v2087_v18 = vpop.permute.xlu0 %815  ;;  %v2091_v26 = vpop.permute.xlu1 %821 }
 0x14f   : > { %2565 = vst [vmem:[#allocation16_spill] sm:$0xff] %v2091_v26  ;;  %v2130_v26 = vsel %vm589_vm1, %v1860_v13, %v367_v4  ;;  %v732_v4 = vsel %vm731_vm2, %v1968_v32, %v1983_v37  ;;  %v733_v13 = vsel %vm731_vm2, %v1983_v37, %v1974_v34 }
 0x150   : > { %550 = vrot.lane.b32.xlu0 %v1887_v20, %s1598_s8  ;;  %544 = vrot.lane.b32.xlu1 %v1858_v12, %s1598_s8 }
 0x152   : > { %v2093_v27 = vpop.permute.xlu0 %819  ;;  %v2097_v1 = vpop.permute.xlu1 %501 }
 0x154   : > { %529 = vrot.lane.b32.xlu0 %v1854_v10, %s1597_s24  ;;  %563 = vrot.lane.b32.xlu1 %v1884_v19, %s1599_s13 }
 0x156   : > { %v2099_v17 = vpop.permute.xlu0 %828  ;;  %v2103_v9 = vpop.permute.xlu1 %505 }
 0x157   : > { %2566 = vst [vmem:[#allocation17_spill] sm:$0xff] %v2099_v17 }
 0x158   : > { %561 = vrot.lane.b32.xlu0 %v1864_v14, %s1599_s13  ;;  %567 = vrot.lane.b32.xlu1 %v1891_v21, %s1599_s13 }
 0x15a   : > { %v2105_v15 = vpop.permute.xlu0 %503  ;;  %v2109_v12 = vpop.permute.xlu1 %831 }
 0x15b   : > { %2567 = vst [vmem:[#allocation18_spill] sm:$0xff] %v2109_v12  ;;  %v368_v12 = vsel %vm364_vm0, %v1987_v38, %v1962_v30  ;;  %v842_v38 = vsel %vm602_vm4, %v2130_v26, %v733_v13  ;;  %v809_v13 = vsel %vm808_vm9, %v2057_v61, %v2055_v60 }
 0x15c   : > { %565 = vrot.lane.b32.xlu0 %v1872_v16, %s1599_s13  ;;  %576 = vrot.lane.b32.xlu1 %v1899_v23, %s1600_s9 }
 0x15e   : > { %v2111_v20 = vpop.permute.xlu0 %507  ;;  %v2116_v19 = vpop.permute.xlu1 %378 }
 0x160   : > { %559 = vrot.lane.b32.xlu0 %v1954_v28, %s1599_s13  ;;  %580 = vrot.lane.b32.xlu1 %v1907_v25, %s1600_s9  ;;  %v365_v28 = vsel %vm364_vm0, %v1965_v31, %v1971_v33  ;;  %v366_v25 = vsel %vm364_vm0, %v1971_v33, %v1977_v35  ;;  %v735_v33 = vsel %vm731_vm2, %v1989_v39, %v1980_v36  ;;  %vm449_vm0 = vcmask 883712  }
 0x161   : > { %v748_v35 = vsel %vm747_vm3, %v1995_v41, %v1993_v40  ;;  %v592_v37 = vsel %vm589_vm1, %v1854_v10, %v365_v28  ;;  %v595_v17 = vsel %vm589_vm1, %v1864_v14, %v366_v25  ;;  %v601_v36 = vsel %vm589_vm1, %v1872_v16, %v368_v12 }
 0x162   : > { %v377_v21 = vpop.permute.xlu0 %376  ;;  %v383_v23 = vpop.permute.xlu1 %382  ;;  %v750_v10 = vsel %vm747_vm3, %v2001_v43, %v1999_v42  ;;  %v751_v14 = vsel %vm747_vm3, %v1999_v42, %v2007_v45  ;;  %v840_v16 = vsel %vm602_vm4, %v595_v17, %v732_v4  ;;  %v763_v12 = vsel %vm762_vm6, %v2005_v44, %v2013_v47 }
 0x163   : > { %v386_v42 = vsel %vm384_vm10, %v377_v21, %v2116_v19  ;;  %v764_v4 = vsel %vm762_vm6, %v2013_v47, %v2011_v46 }
 0x164   : > { %578 = vrot.lane.b32.xlu0 %v1895_v22, %s1600_s9  ;;  %v749_v22 = vsel %vm747_vm3, %v1993_v40, %v2001_v43  ;;  %574 = vrot.lane.b32.xlu1 %v1960_v29, %s1600_s9  ;;  %v734_v40 = vsel %vm731_vm2, %v1974_v34, %v1989_v39  ;;  %v850_v34 = vsel %vm611_vm5, %v840_v16, %v748_v35  ;;  %vm419_vm2 = vcmask 957440  }
 0x165   : > { %v852_v3 = vsel %vm611_vm5, %v842_v38, %v749_v22  ;;  %v844_v45 = vsel %vm602_vm4, %v601_v36, %v734_v40  ;;  %v781_v40 = vsel %vm778_vm7, %v2031_v53, %v2029_v52  ;;  %vm464_vm3 = vcmask 875520  }
 0x166   : > { %v381_v31 = vpop.permute.xlu0 %380  ;;  %v397_v29 = vpop.permute.xlu1 %396  ;;  %v854_v22 = vsel %vm611_vm5, %v844_v45, %v750_v10 }
 0x167   : > { %v388_v10 = vsel %vm384_vm10, %v381_v31, %v383_v23  ;;  %v387_v16 = vsel %vm384_vm10, %v2116_v19, %v381_v31  ;;  %v780_v23 = vsel %vm778_vm7, %v2023_v50, %v2031_v53  ;;  %v810_v53 = vsel %vm808_vm9, %v2055_v60, %v2063_v63 }
 0x168   : > { %582 = vrot.lane.b32.xlu0 %v1903_v24, %s1600_s9  ;;  %v836_v24 = vsel %vm589_vm1, %v1849_v7, %v1962_v30  ;;  %930 = vrot.lane.b32.xlu1 %v852_v3, %s1601_s16  ;;  %v838_v7 = vsel %vm602_vm4, %v592_v37, %v1968_v32  ;;  %v779_v30 = vsel %vm778_vm7, %v2025_v51, %v2023_v50 }
 0x169   : > { %v846_v39 = vsel %vm602_vm4, %v836_v24, %v735_v33  ;;  %v848_v3 = vsel %vm611_vm5, %v838_v7, %v1995_v41  ;;  %v794_v32 = vsel %vm793_vm8, %v2035_v54, %v2043_v57  ;;  %v765_v41 = vsel %vm762_vm6, %v2011_v46, %v2019_v49 }
 0x16a   : > { %v375_v28 = vpop.permute.xlu0 %374  ;;  %v401_v43 = vpop.permute.xlu1 %400  ;;  %v856_v25 = vsel %vm611_vm5, %v846_v39, %v751_v14  ;;  %v862_v38 = vsel %vm589_vm1, %v763_v12, %v779_v30  ;;  %v606_v24 = vsel %vm602_vm4, %v595_v17, %v386_v42  ;;  %v796_v46 = vsel %vm793_vm8, %v2041_v56, %v2050_v59 }
 0x16b   : > { %v385_v33 = vsel %vm384_vm10, %v375_v28, %v377_v21  ;;  %v875_v28 = vsel %vm602_vm4, %v862_v38, %v794_v32  ;;  %v811_v7 = vsel %vm808_vm9, %v2063_v63, %v2061_v62  ;;  %v868_v31 = vsel %vm589_vm1, %v765_v41, %v781_v40 }
 0x16c   : > { %928 = vrot.lane.b32.xlu0 %v850_v34, %s1601_s16  ;;  %934 = vrot.lane.b32.xlu1 %v856_v25, %s1601_s16  ;;  %v885_v17 = vsel %vm611_vm5, %v875_v28, %v809_v13  ;;  %v604_v39 = vsel %vm602_vm4, %v592_v37, %v385_v33  ;;  %v610_v50 = vsel %vm602_vm4, %v601_v36, %v388_v10  ;;  %v1602_v13 = vmov 0  }
 0x16d   : > { %v879_v32 = vsel %vm602_vm4, %v868_v31, %v796_v46  ;;  %v782_v60 = vsel %vm778_vm7, %v2029_v52, %v2037_v55  ;;  %v797_v25 = vsel %vm793_vm8, %v2050_v59, %v2048_v58  ;;  %v766_v52 = vsel %vm762_vm6, %v2019_v49, %v2017_v48  ;;  %1026 = vmatprep.mubr.bf16.mxu0 %v1602_v13 }
 0x16e   : > { %v399_v35 = vpop.permute.xlu0 %398  ;;  %v395_v21 = vpop.permute.xlu1 %394  ;;  %v889_v36 = vsel %vm611_vm5, %v879_v32, %v811_v7  ;;  %v824_v48 = vsel %vm823_vm12, %v2079_v6, %v2087_v18  ;;  %v2292_v49 = vsel %vm509_vm13, %v2097_v1, %v2105_v15  ;;  %v826_v33 = vsel %vm823_vm12, %v2085_v11, %v2093_v27  ;;  %1067 = vmatprep.mubr.bf16.mxu1 %v1602_v13 }
 0x16f   : > { %v406_v47 = vsel %vm404_vm11, %v397_v29, %v399_v35  ;;  %v405_v34 = vsel %vm404_vm11, %v395_v21, %v397_v29  ;;  %v407_v30 = vsel %vm404_vm11, %v399_v35, %v401_v43  ;;  %v795_v29 = vsel %vm793_vm8, %v2043_v57, %v2041_v56  ;;  %1391 = vset.pattern.permute.xlu1 %v1602_v13 }
 0x170   : > { %932 = vrot.lane.b32.xlu0 %v854_v22, %s1601_s16  ;;  %v616_v14 = vsel %vm611_vm5, %v606_v24, %v406_v47  ;;  %938 = vrot.lane.b32.xlu1 %v885_v17, %s1601_s16  ;;  %v613_v19 = vsel %vm611_vm5, %v604_v39, %v405_v34  ;;  %v608_v56 = vsel %vm602_vm4, %v2130_v26, %v387_v16  ;;  %v2568_v24 = vld [vmem:[#allocation15_spill] sm:$0xff]  ;;  %v2569_v17 = vld [vmem:[#allocation17_spill] sm:$0xff]  ;;  %vm479_vm6 = vcmask 867328  }
 0x171   : > { %994 = vmatprep.subr.bf16.mxu0 %v616_v14  ;;  %v865_v57 = vsel %vm589_vm1, %v764_v4, %v780_v23  ;;  %v859_v26 = vsel %vm589_vm1, %v2005_v44, %v2025_v51  ;;  %v812_v4 = vsel %vm808_vm9, %v2061_v62, %v2069_v2  ;;  %v871_v51 = vsel %vm589_vm1, %v766_v52, %v782_v60  ;;  %v1076_v39 = vld [vmem:[#allocation2] sm:$0x1]  ;;  %v2570_v23 = vld [vmem:[#allocation18_spill] sm:$0xff] }
 0x172   : > { %v403_v42 = vpop.permute.xlu0 %402  ;;  %995 = vmatpush1.bf16.msra.mxu0 %v613_v19  ;;  %v2249_v45 = vpop.permute.xlu1 %413  ;;  %v873_v55 = vsel %vm602_vm4, %v859_v26, %v2035_v54  ;;  %v881_v59 = vsel %vm602_vm4, %v871_v51, %v797_v25  ;;  %v2301_v62 = vsel %vm494_vm14, %v2067_v0, %v2075_v5  ;;  %v894_v38 = vsel %vm589_vm1, %v2079_v6, %v2067_v0 }
 0x173   : > { %v408_v37 = vsel %vm404_vm11, %v401_v43, %v403_v42  ;;  %v619_v43 = vsel %vm611_vm5, %v608_v56, %v407_v30  ;;  %v883_v58 = vsel %vm611_vm5, %v873_v55, %v2057_v61  ;;  %v891_v61 = vsel %vm611_vm5, %v881_v59, %v812_v4  ;;  %1392 = vset.pattern.permute.xlu0 %v1602_v13  ;;  %v2571_v30 = vld [vmem:[#allocation16_spill] sm:$0xff] }
 0x174   : > { %926 = vrot.lane.b32.xlu0 %v848_v3, %s1601_s16  ;;  %v622_v12 = vsel %vm611_vm5, %v610_v50, %v408_v37  ;;  %942 = vrot.lane.b32.xlu1 %v889_v36, %s1601_s16  ;;  %v877_v3 = vsel %vm602_vm4, %v865_v57, %v795_v29  ;;  %v896_v2 = vsel %vm589_vm1, %v824_v48, %v2301_v62  ;;  %vm524_vm7 = vcmask 211968  }
 0x175   : > { %1035 = vmatprep.subr.bf16.mxu1 %v622_v12  ;;  %v887_v22 = vsel %vm611_vm5, %v877_v3, %v810_v53  ;;  %v906_v35 = vsel %vm602_vm4, %v896_v2, %v2292_v49  ;;  %v2318_v40 = vsel %vm509_vm13, %v2103_v9, %v2111_v20  ;;  %v2324_v46 = vsel %vm494_vm14, %v2568_v24, %v2081_v8 }
 0x176   : > { %v2261_v63 = vpop.permute.xlu0 %411  ;;  %1036 = vmatpush1.bf16.msra.mxu1 %v619_v43  ;;  %v2281_v44 = vpop.permute.xlu1 %417  ;;  %v825_v10 = vsel %vm823_vm12, %v2087_v18, %v2085_v11  ;;  %v905_v6 = vsel %vm602_vm4, %v894_v38, %v2097_v1  ;;  %v900_v21 = vsel %vm589_vm1, %v826_v33, %v2324_v46  ;;  %v2336_v14 = vsel %vm509_vm13, %v2105_v15, %v2103_v9 }
 0x177   : > { %v2342_v16 = vsel %vm494_vm14, %v2075_v5, %v2568_v24  ;;  %v908_v11 = vsel %vm602_vm4, %v900_v21, %v2318_v40  ;;  %v830_v9 = vsel %vm494_vm14, %v2081_v8, %v2569_v17  ;;  %v833_v5 = vsel %vm509_vm13, %v2111_v20, %v2570_v23 }
 0x178   : > { %940 = vrot.lane.b32.xlu0 %v887_v22, %s1601_s16  ;;  %936 = vrot.lane.b32.xlu1 %v883_v58, %s1601_s16  ;;  %v898_v18 = vsel %vm589_vm1, %v825_v10, %v2342_v16  ;;  %v827_v42 = vsel %vm823_vm12, %v2093_v27, %v2571_v30  ;;  %v421_v57 = vsel %vm419_vm2, %v2261_v63, %v2249_v45  ;;  %vm554_vm8 = vcmask 138240  }
 0x179   : > { %v907_v15 = vsel %vm602_vm4, %v898_v18, %v2336_v14  ;;  %v903_v19 = vsel %vm589_vm1, %v827_v42, %v830_v9  ;;  %vm569_vm9 = vcmask 130048   ;;  %vm539_vm10 = vcmask 146432  }
 0x17a   : > { %v2294_v54 = vpop.permute.xlu0 %415  ;;  %v429_v41 = vpop.permute.xlu1 %428  ;;  %v910_v8 = vsel %vm602_vm4, %v903_v19, %v833_v5  ;;  %vm584_vm11 = vcmask 64512   ;;  %vm956_vm12 = vcmask 56320  }
 0x17b   : > { %v423_v48 = vsel %vm419_vm2, %v2294_v54, %v2281_v44 }
 0x17c   : > { %944 = vrot.lane.b32.xlu0 %v891_v61, %s1601_s16  ;;  %948 = vrot.lane.b32.xlu1 %v906_v35, %s1601_s16 }
 0x17e   : > { %v427_v47 = vpop.permute.xlu0 %426  ;;  %v433_v28 = vpop.permute.xlu1 %432 }
 0x17f   : > { %v436_v32 = vsel %vm434_vm15, %v427_v47, %v429_v41 }
 0x180   : > { %946 = vrot.lane.b32.xlu0 %v905_v6, %s1601_s16  ;;  %952 = vrot.lane.b32.xlu1 %v908_v11, %s1601_s16  ;;  %v629_v43 = vsel %vm589_vm1, %v421_v57, %v436_v32 }
 0x182   : > { %v431_v34 = vpop.permute.xlu0 %430  ;;  %v425_v7 = vpop.permute.xlu1 %424 }
 0x183   : > { %v438_v26 = vsel %vm434_vm15, %v431_v34, %v433_v28  ;;  %v435_v25 = vsel %vm434_vm15, %v425_v7, %v427_v47  ;;  %v437_v55 = vsel %vm434_vm15, %v429_v41, %v431_v34  ;;  %v422_v41 = vsel %vm419_vm2, %v2249_v45, %v2294_v54 }
 0x184   : > { %950 = vrot.lane.b32.xlu0 %v907_v15, %s1601_s16  ;;  %1079 = vperm.xlu1 %1391, %v1076_v39   ;;  %v635_v13 = vsel %vm589_vm1, %v423_v48, %v438_v26  ;;  %v632_v44 = vsel %vm589_vm1, %v422_v41, %v437_v55 }
 0x186   : > { %v410_v31 = vpop.permute.xlu0 %409  ;;  %v444_v29 = vpop.permute.xlu1 %443 }
 0x187   : > { %v420_v36 = vsel %vm419_vm2, %v410_v31, %v2261_v63 }
 0x188   : > { %954 = vrot.lane.b32.xlu0 %v910_v8, %s1601_s16  ;;  %v626_v4 = vsel %vm589_vm1, %v420_v36, %v435_v25 }
 0x18a   : > { %v442_v37 = vpop.permute.xlu0 %441  ;;  %v448_v50 = vpop.permute.xlu1 %447 }
 0x18b   : > { %v451_v27 = vsel %vm449_vm0, %v442_v37, %v444_v29 }
 0x18c   : > { %v639_v52 = vsel %vm602_vm4, %v629_v43, %v451_v27 }
 0x18e   : > { %v446_v53 = vpop.permute.xlu0 %445  ;;  %v457_v20 = vpop.permute.xlu1 %456 }
 0x18f   : > { %v453_v51 = vsel %vm449_vm0, %v446_v53, %v448_v50  ;;  %v452_v59 = vsel %vm449_vm0, %v444_v29, %v446_v53 }
 0x190   : > { %v643_v24 = vsel %vm602_vm4, %v635_v13, %v453_v51  ;;  %v641_v21 = vsel %vm602_vm4, %v632_v44, %v452_v59 }
 0x192   : > { %v440_v12 = vpop.permute.xlu0 %439  ;;  %v461_v56 = vpop.permute.xlu1 %460 }
 0x193   : > { %v450_v60 = vsel %vm449_vm0, %v440_v12, %v442_v37 }
 0x194   : > { %v637_v2 = vsel %vm602_vm4, %v626_v4, %v450_v60 }
 0x196   : > { %v459_v3 = vpop.permute.xlu0 %458  ;;  %v455_v63 = vpop.permute.xlu1 %454 }
 0x197   : > { %v466_v22 = vsel %vm464_vm3, %v457_v20, %v459_v3  ;;  %v465_v61 = vsel %vm464_vm3, %v455_v63, %v457_v20  ;;  %v467_v33 = vsel %vm464_vm3, %v459_v3, %v461_v56 }
 0x198   : > { %v648_v58 = vsel %vm611_vm5, %v639_v52, %v466_v22  ;;  %v645_v38 = vsel %vm611_vm5, %v637_v2, %v465_v61  ;;  %v651_v45 = vsel %vm611_vm5, %v641_v21, %v467_v33 }
 0x199   : > { %996 = vmatprep.subr.bf16.mxu0 %v648_v58 }
 0x19a   : > { %v463_v35 = vpop.permute.xlu0 %462  ;;  %997 = vmatpush1.bf16.msra.mxu0 %v645_v38  ;;  %v474_v10 = vpop.permute.xlu1 %473 }
 0x19b   : > { %v468_v47 = vsel %vm464_vm3, %v461_v56, %v463_v35 }
 0x19c   : > { %v654_v6 = vsel %vm611_vm5, %v643_v24, %v468_v47 }
 0x19d   : > { %1037 = vmatprep.subr.bf16.mxu1 %v654_v6 }
 0x19e   : > { %v472_v54 = vpop.permute.xlu0 %471  ;;  %1038 = vmatpush1.bf16.msra.mxu1 %v651_v45  ;;  %v478_v28 = vpop.permute.xlu1 %477 }
 0x19f   : > { %v481_v9 = vsel %vm479_vm6, %v472_v54, %v474_v10 }
 0x1a0   : > { %v661_v39 = vsel %vm589_vm1, %v481_v9, %v2301_v62 }
 0x1a1   : > { %v671_v29 = vsel %vm602_vm4, %v661_v39, %v2292_v49 }
 0x1a2   : > { %v476_v11 = vpop.permute.xlu0 %475  ;;  %v485_v18 = vpop.permute.xlu1 %484 }
 0x1a3   : > { %v483_v5 = vsel %vm479_vm6, %v476_v11, %v478_v28  ;;  %v482_v30 = vsel %vm479_vm6, %v474_v10, %v476_v11  ;;  %v495_v31 = vsel %vm494_vm14, %v485_v18, %v2067_v0 }
 0x1a4   : > { %v667_v62 = vsel %vm589_vm1, %v483_v5, %v2324_v46 }
 0x1a5   : > { %v675_v27 = vsel %vm602_vm4, %v667_v62, %v2318_v40 }
 0x1a6   : > { %v470_v34 = vpop.permute.xlu0 %469  ;;  %v517_v17 = vpop.permute.xlu1 %516 }
 0x1a7   : > { %v480_v7 = vsel %vm479_vm6, %v470_v34, %v472_v54 }
 0x1a8   : > { %v658_v37 = vsel %vm589_vm1, %v480_v7, %v495_v31 }
 0x1aa   : > { %v500_v15 = vpop.permute.xlu0 %499  ;;  %v521_v23 = vpop.permute.xlu1 %520 }
 0x1ab   : > { %v510_v42 = vsel %vm509_vm13, %v500_v15, %v2097_v1  ;;  %v664_v1 = vsel %vm589_vm1, %v482_v30, %v2342_v16 }
 0x1ac   : > { %v669_v0 = vsel %vm602_vm4, %v658_v37, %v510_v42  ;;  %v673_v16 = vsel %vm602_vm4, %v664_v1, %v2336_v14 }
 0x1ae   : > { %v519_v19 = vpop.permute.xlu0 %518  ;;  %v515_v50 = vpop.permute.xlu1 %514 }
 0x1af   : > { %v526_v8 = vsel %vm524_vm7, %v517_v17, %v519_v19  ;;  %v525_v20 = vsel %vm524_vm7, %v515_v50, %v517_v17  ;;  %v527_v12 = vsel %vm524_vm7, %v519_v19, %v521_v23 }
 0x1b0   : > { %v680_v53 = vsel %vm611_vm5, %v671_v29, %v526_v8  ;;  %v677_v49 = vsel %vm611_vm5, %v669_v0, %v525_v20  ;;  %v683_v36 = vsel %vm611_vm5, %v673_v16, %v527_v12 }
 0x1b1   : > { %998 = vmatprep.subr.bf16.mxu0 %v680_v53 }
 0x1b2   : > { %v523_v32 = vpop.permute.xlu0 %522  ;;  %999 = vmatpush1.bf16.msra.mxu0 %v677_v49  ;;  %v534_v56 = vpop.permute.xlu1 %533 }
 0x1b3   : > { %v528_v46 = vsel %vm524_vm7, %v521_v23, %v523_v32 }
 0x1b4   : > { %v686_v57 = vsel %vm611_vm5, %v675_v27, %v528_v46 }
 0x1b5   : > { %1039 = vmatprep.subr.bf16.mxu1 %v686_v57 }
 0x1b6   : > { %v532_v43 = vpop.permute.xlu0 %531  ;;  %1040 = vmatpush1.bf16.msra.mxu1 %v683_v36  ;;  %v538_v60 = vpop.permute.xlu1 %537 }
 0x1b7   : > { %v541_v41 = vsel %vm539_vm10, %v532_v43, %v534_v56 }
 0x1ba   : > { %v536_v3 = vpop.permute.xlu0 %535  ;;  %v549_v26 = vpop.permute.xlu1 %548 }
 0x1bb   : > { %v543_v11 = vsel %vm539_vm10, %v536_v3, %v538_v60  ;;  %v542_v9 = vsel %vm539_vm10, %v534_v56, %v536_v3 }
 0x1be   : > { %v547_v25 = vpop.permute.xlu0 %546  ;;  %v553_v22 = vpop.permute.xlu1 %552 }
 0x1bf   : > { %v556_v59 = vsel %vm554_vm8, %v547_v25, %v549_v26 }
 0x1c0   : > { %v693_v33 = vsel %vm589_vm1, %v541_v41, %v556_v59 }
 0x1c2   : > { %v551_v52 = vpop.permute.xlu0 %550  ;;  %v545_v55 = vpop.permute.xlu1 %544 }
 0x1c3   : > { %v558_v44 = vsel %vm554_vm8, %v551_v52, %v553_v22  ;;  %v555_v47 = vsel %vm554_vm8, %v545_v55, %v547_v25  ;;  %v557_v6 = vsel %vm554_vm8, %v549_v26, %v551_v52 }
 0x1c4   : > { %v699_v15 = vsel %vm589_vm1, %v543_v11, %v558_v44  ;;  %v696_v7 = vsel %vm589_vm1, %v542_v9, %v557_v6 }
 0x1c6   : > { %v530_v4 = vpop.permute.xlu0 %529  ;;  %v564_v40 = vpop.permute.xlu1 %563 }
 0x1c7   : > { %v540_v13 = vsel %vm539_vm10, %v530_v4, %v532_v43 }
 0x1c8   : > { %v690_v21 = vsel %vm589_vm1, %v540_v13, %v555_v47 }
 0x1ca   : > { %v562_v51 = vpop.permute.xlu0 %561  ;;  %v568_v63 = vpop.permute.xlu1 %567 }
 0x1cb   : > { %v571_v61 = vsel %vm569_vm9, %v562_v51, %v564_v40 }
 0x1cc   : > { %v703_v10 = vsel %vm602_vm4, %v693_v33, %v571_v61  ;;  %v1603_v61 = vmov 1966171168  }
 0x1ce   : > { %v566_v58 = vpop.permute.xlu0 %565  ;;  %v577_v48 = vpop.permute.xlu1 %576 }
 0x1cf   : > { %v573_v45 = vsel %vm569_vm9, %v566_v58, %v568_v63  ;;  %v572_v18 = vsel %vm569_vm9, %v564_v40, %v566_v58  ;;  %v977_v40 = vld [vmem:[#allocation8] sm:$0xf] }
 0x1d0   : > { %v707_v42 = vsel %vm602_vm4, %v699_v15, %v573_v45  ;;  %v705_v8 = vsel %vm602_vm4, %v696_v7, %v572_v18 }
 0x1d2   : > { %v560_v14 = vpop.permute.xlu0 %559  ;;  %v581_v2 = vpop.permute.xlu1 %580 }
 0x1d3   : > { %v570_v35 = vsel %vm569_vm9, %v560_v14, %v562_v51 }
 0x1d4   : > { %v701_v17 = vsel %vm602_vm4, %v690_v21, %v570_v35 }
 0x1d6   : > { %v579_v38 = vpop.permute.xlu0 %578  ;;  %v575_v54 = vpop.permute.xlu1 %574 }
 0x1d7   : > { %v586_v24 = vsel %vm584_vm11, %v577_v48, %v579_v38  ;;  %v585_v34 = vsel %vm584_vm11, %v575_v54, %v577_v48  ;;  %v587_v39 = vsel %vm584_vm11, %v579_v38, %v581_v2  ;;  %v2572_v48 = vld [vmem:[#allocation14_spill] sm:$0xff] }
 0x1d8   : > { %v712_v28 = vsel %vm611_vm5, %v703_v10, %v586_v24  ;;  %v709_v5 = vsel %vm611_vm5, %v701_v17, %v585_v34  ;;  %v715_v29 = vsel %vm611_vm5, %v705_v8, %v587_v39  ;;  %v1084_v14 = vsub.s32 0, %v2572_v48 }
 0x1d9   : > { %1000 = vmatprep.subr.bf16.mxu0 %v712_v28  ;;  %v2573_v39 = vlaneseq }
 0x1da   : > { %v583_v23 = vpop.permute.xlu0 %582  ;;  %1001 = vmatpush1.bf16.msra.mxu0 %v709_v5  ;;  %v931_v19 = vpop.permute.xlu1 %930 }
 0x1db   : > { %v588_v30 = vsel %vm584_vm11, %v581_v2, %v583_v23  ;;  %v1097_v2 = vunpack.c.l.s4 %v1603_v61  ;;  %vm1121_vm1 = vcmp.lt.s32.totalorder %v2573_v39, 512 }
 0x1dc   : > { %v718_v31 = vsel %vm611_vm5, %v707_v42, %v588_v30 }
 0x1dd   : > { %1041 = vmatprep.subr.bf16.mxu1 %v718_v31  ;;  %v1098_v33 = vunpack.c.0.s8 %v1097_v2 }
 0x1de   : > { %v929_v62 = vpop.permute.xlu0 %928  ;;  %1042 = vmatpush1.bf16.msra.mxu1 %v715_v29  ;;  %v935_v50 = vpop.permute.xlu1 %934 }
 0x1df   : > { %v958_v37 = vsel %vm956_vm12, %v929_v62, %v931_v19  ;;  %v1101_v21 = vsub.s32 %v1098_v33, %v2572_v48 }
 0x1e0   : > { %1002 = vmatprep.subr.bf16.mxu0 %v958_v37 }
 0x1e2   : > { %v933_v53 = vpop.permute.xlu0 %932  ;;  %v939_v0 = vpop.permute.xlu1 %938 }
 0x1e3   : > { %v960_v1 = vsel %vm956_vm12, %v933_v53, %v935_v50  ;;  %v959_v20 = vsel %vm956_vm12, %v931_v19, %v933_v53 }
 0x1e4   : > { %1043 = vmatprep.subr.bf16.mxu1 %v960_v1 }
 0x1e5   : > { %1044 = vmatpush1.bf16.msra.mxu1 %v959_v20 }
 0x1e6   : > { %v927_v12 = vpop.permute.xlu0 %926  ;;  %v943_v49 = vpop.permute.xlu1 %942 }
 0x1e7   : > { %v957_v32 = vsel %vm956_vm12, %v927_v12, %v929_v62 }
 0x1e8   : > { %1003 = vmatpush1.bf16.msra.mxu0 %v957_v32 }
 0x1ea   : > { %v941_v46 = vpop.permute.xlu0 %940  ;;  %v937_v56 = vpop.permute.xlu1 %936 }
 0x1eb   : > { %v962_v27 = vsel %vm956_vm12, %v939_v0, %v941_v46  ;;  %v961_v57 = vsel %vm956_vm12, %v937_v56, %v939_v0  ;;  %v963_v43 = vsel %vm956_vm12, %v941_v46, %v943_v49 }
 0x1ec   : > { %1004 = vmatprep.subr.bf16.mxu0 %v962_v27 }
 0x1ed   : > { %1005 = vmatpush1.bf16.msra.mxu0 %v961_v57 }
 0x1ee   : > { %v945_v16 = vpop.permute.xlu0 %944  ;;  %v949_v60 = vpop.permute.xlu1 %948 }
 0x1ef   : > { %v964_v36 = vsel %vm956_vm12, %v943_v49, %v945_v16 }
 0x1f0   : > { %1045 = vmatprep.subr.bf16.mxu1 %v964_v36 }
 0x1f1   : > { %1046 = vmatpush1.bf16.msra.mxu1 %v963_v43 }
 0x1f2   : > { %v947_v3 = vpop.permute.xlu0 %946  ;;  %v953_v52 = vpop.permute.xlu1 %952 }
 0x1f3   : > { %v965_v26 = vsel %vm956_vm12, %v947_v3, %v949_v60 }
 0x1f4   : > { %v983_v55 = vsel %vm611_vm5, %v965_v26, 0 }
 0x1f6   : > { %v951_v25 = vpop.permute.xlu0 %950 }
 0x1f7   : > { %v966_v22 = vsel %vm956_vm12, %v949_v60, %v951_v25  ;;  %v967_v4 = vsel %vm956_vm12, %v951_v25, %v953_v52 }
 0x1f8   : > { %1276 = vmatprep.subr.msk.bf16.mxu0 %vm611_vm5, %v966_v22  ;;  %v989_v58 = vsel %vm611_vm5, %v967_v4, 0 }
 0x1f9   : > { %1007 = vmatpush1.bf16.msra.mxu0 %v983_v55 }
 0x1fa   : > { %v955_v51 = vpop.permute.xlu0 %954 }
 0x1fb   : > { %v968_v63 = vsel %vm956_vm12, %v953_v52, %v955_v51 }
 0x1fc   : > { %1278 = vmatprep.subr.msk.bf16.mxu1 %vm611_vm5, %v968_v63  ;;  %1277 = vmatmul.mubr.msk.bf16.vlgmr.msra.gmra.mrb[0].mxu0 %vm449_vm0, %v977_v40 }
 0x1fd   : > { %1048 = vmatpush1.bf16.msra.mxu1 %v989_v58 }
 0x200   : > { %1279 = vmatmul.mubr.msk.bf16.vlgmr.msra.gmra.mrb[0].mxu1 %vm449_vm0, %v977_v40 }
 0x203   : > { %v1080_v59 = vpop.permute.xlu1 %1079 }
 0x204   : > { %v1085_v41 = vrot.slane %v1080_v59, %v1084_v14 }
 0x2cf   : > { %v1028_v13 = vpop.f32.mrb[0].mxu0 }
 0x2d0   : > { %v1030_v35 = vpop.f32.mrb[1].mxu0  ;;  %v1086_v38 = vadd.f32 %v1085_v41, %v1028_v13 }
 0x2d1   : > { %v1087_v44 = vadd.f32 %v1085_v41, %v1030_v35  ;;  %v1032_v47 = vpop.f32.mrb[2].mxu0 }
 0x2d2   : > { %v1033_v24 = vpop.f32.mrb[3].mxu0 }
 0x2d3   : > { %v1069_v10 = vpop.f32.mrb[0].mxu1  ;;  %v1094_v6 = vcombine.low %v1086_v38, %v1087_v44 }
 0x2d4   : > { %v1088_v45 = vadd.f32 %v1085_v41, %v1069_v10  ;;  %v1071_v54 = vpop.f32.mrb[1].mxu1 }
 0x2d5   : > { %v1089_v28 = vadd.f32 %v1085_v41, %v1071_v54  ;;  %v1073_v11 = vpop.f32.mrb[2].mxu1  ;;  %v1102_v17 = vrot.slane %v1094_v6, %v1101_v21 }
 0x2d6   : > { %v1074_v18 = vpop.f32.mrb[3].mxu1 }
 0x2d7   : > { %v1095_v34 = vcombine.low %v1088_v45, %v1089_v28 }
 0x2d9   : > { %v1109_v9 = vrot.slane %v1095_v34, %v1101_v21 }
 0x2db   : > { %v1110_v15 = vcombine.low %v1102_v17, %v1109_v9 }
 0x2dd   : > { %v1117_v23 = vrot.slane %v1110_v15, %v1101_v21 }
 0x2df   : > { %1123 = vst.msk [vmem:[%s305_s15] sm:$0xf] %vm1121_vm1, %v1117_v23 }
 0x2e0   : > { %1496 = shalt.err (!%p1493_p12)
}
 0x2e1   : > { %s1497_s2 = scalar_lea.hbm %s2480_s30, 64  ;;  %s1501_s3 = scalar_lea.hbm %s2533_s4, 128 }
 0x2e2   : > { %p1498_p2 = scmp.ne.s32.totalorder %s2480_s30, %s1497_s2  ;;  %p1502_p1 = scmp.lt.u32.totalorder %s2480_s30, %s2533_s4 }
 0x2e3   : > { %p1503_p11 = scmp.lt.u32.totalorder %s1501_s3, %s1497_s2  ;;  %p1505_p8 = scmp.lt.u32.totalorder %s1497_s2, %s2480_s30 }
 0x2e4   : > { %p1499_p6 = pnand %p1498_p2, %p2574_p10 }
 0x2e5   : > { %p1504_p7 = por %p1503_p11, %p1502_p1 }
 0x2e6   : > { %p1500_p0 = pneg %p1499_p6 }
 0x2e7   : > { %p1506_p13 = por %p1505_p8, %p1504_p7 }
 0x2e9   : > { %p1507_p3 = pnand %p1506_p13, %p1500_p0 }
 0x2eb   : > { %1510 = shalt.err (!%p1507_p3)
}
 0x2ec   : > { %1295 = dma.vmem_to_hbm [thread:$0]  (%p2574_p10), %s2482_s23, 64, %s2480_s30, %s1125_s7  }
 0x2ed PF: > { %s1153_s13 = sand.u32 1, %s1553_s17   ;;  %p2575_p5 = scmp.ne.s32.totalorder %s2547_s26, 0 }
 0x2ee   : > { %p2576_p9 = scmp.ge.s32.totalorder %s1573_s22, 2  ;;  %s1154_s9 = scalar_lea.sflag [#allocation5], %s1153_s13 }
 0x2f0   : > { %p1309_p4 = pnand %p2576_p9, %p2575_p5 }
 0x2f2   : > { %1548 = dma.done.wait (!%p1309_p4), %s1154_s9, 64  }
 0x2f3   : > { %1550 = vsyncadd (!%p1309_p4), %s1154_s9, 4294967232  ;;  %s25_s22 = sadd.s32 1, %s1573_s22   ;;  %s2577_s17 = smov %s1557_s18 }
 0x2f4   : > { %p22_p12 = scmp.ge.s32.totalorder %s25_s22, 4   ;;  %s2578_s18 = smov %s1561_s19 }
 0x2f5   : > { %s2579_s19 = smov %s1748_s10  ;;  %s2580_s20 = smov %s1569_s21 }
 0x2f6   : > { %s2581_s21 = smov %s2583_s6  ;;  %24 = sbr.rel (!%p22_p12) target bundleno = 11 (0xb), region = 98 }
 0x2fd   :  { %1159 = vsyncpa [#allocation4], 1 }
 0x2fe   :  { %1161 = vsyncpa [#allocation4 + $0x1], 1 }
 0x2ff   :  { %1162 = vsyncpa [#allocation7], 1 }
 0x300   :  { %1164 = vsyncpa [#allocation7 + $0x1], 1 }
 0x301   :  { %1165 = vsyncpa [#allocation5], 1 }
 0x302   :  { %1167 = vsyncpa [#allocation5 + $0x1], 1 }

// kernel: vrm_forward.2
= control target key start
LH: loop header
LB: loop body
LE: loop exit
PB: predicated region body
PF: predicated region fallthrough
CT: control target
= control target key end

     0   :  { %s2989_s0 = inlined_call_operand.hbm [shape: bf16[2,4,800], index: 0, kind: input, shape index: {}, may-alias: {0,1}]   ;;  %s2990_s1 = inlined_call_operand.hbm [shape: bf16[2,4,800], index: 1, kind: input, shape index: {}, may-alias: {0,1}]   ;;  %s2991_s2 = inlined_call_operand.hbm [shape: bf16[8,108], index: 2, kind: input, shape index: {}]   ;;  %s2992_s3 = inlined_call_operand.hbm [shape: f32[8,1], index: 3, kind: input, shape index: {}]   ;;  %s2993_s4 = inlined_call_operand.hbm [shape: bf16[4,8], index: 4, kind: input, shape index: {}]   ;;  %s2994_s5 = inlined_call_operand.hbm [shape: f32[4,1], index: 5, kind: input, shape index: {}]   ;;  %s2995_s6 = inlined_call_operand.hbm [shape: bf16[2,4,512], index: 6, kind: output, shape index: {}]  }
   0x1   :  { %3004 = sst [smem:[#allocation25_spill]] %s2989_s0 }
   0x2   :  { %3005 = sst [smem:[#allocation26_spill]] %s2991_s2 }
   0x3   :  { %3006 = sst [smem:[#allocation27_spill]] %s2992_s3 }
   0x4   :  { %3007 = sst [smem:[#allocation28_spill]] %s2993_s4 }
   0x5   :  { %3008 = sst [smem:[#allocation29_spill]] %s2994_s5 }
   0x6   :  { %11 = vsyncpa [#allocation3], 0 }
   0x7   :  { %13 = vsyncpa [#allocation3 + $0x1], 0 }
   0x8   :  { %14 = vsyncpa [#allocation6], 0 }
   0x9   :  { %16 = vsyncpa [#allocation6 + $0x1], 0 }
   0xa   :  { %17 = vsyncpa [#allocation9], 0 }
   0xb   :  { %18 = vsyncpa [#allocation12], 0 }
   0xc   :  { %19 = vsyncpa [#allocation4], 0 }
   0xd   :  { %21 = vsyncpa [#allocation4 + $0x1], 0  ;;  %s2012_s21 = smov 0   ;;  %s2014_s22 = smov 0  }
   0xe   :  { %s2016_s23 = smov 0   ;;  %s2018_s24 = smov 0  }
   0xf   :  { %s2020_s25 = smov 0   ;;  %s2022_s26 = smov 0  }
  0x10 LB: > { %s2043_s27 = sadd.s32 4294967295, %s1943_s26   ;;  %p1500_p0 = scmp.ge.s32.totalorder %s1943_s26, 1  ;;  %s1943_s26 = sphi %s2022_s26, %s27_s26   ;;  %s1939_s25 = sphi %s2020_s25, %s3050_s25   ;;  %s1935_s24 = sphi %s2018_s24, %s3049_s24   ;;  %s1931_s23 = sphi %s2016_s23, %s3048_s23   ;;  %s1927_s22 = sphi %s2014_s22, %s3047_s22   ;;  %s1923_s21 = sphi %s2012_s21, %s3046_s21  }
  0x11   : > { %p2996_p1 = scmp.eq.s32.totalorder %s2043_s27, 0  ;;  %p216_p2 = scmp.lt.s32.totalorder %s1943_s26, 3 }
  0x12   : > { %s1945_s29 = smov [#allocation7]   ;;  %s1946_s7 = smov [#allocation8]  }
  0x13   : > { %p2048_p3 = pnand %p1500_p0, %p216_p2  ;;  %s229_s30 = sshll.u32 %s1945_s29, 4  ;;  %s230_s30 = int_to_ptr.vmem [resolvable:$true] %s229_s30 }
  0x14   : > { %s240_s8 = sshll.u32 %s1946_s7, 4  ;;  %s1947_s10 = smov [#allocation10]   ;;  %s2061_s8 = int_to_ptr.vmem [resolvable:$true] %s240_s8 }
  0x15   : > { %s3009_s28 = scalar_select %p2048_p3, 1, 0 }
  0x16   : > { %p1558_p5 = pneg %p2048_p3  ;;  %s251_s11 = sshll.u32 %s1947_s10, 4  ;;  %s2063_s11 = int_to_ptr.vmem [resolvable:$true] %s251_s11 }
  0x17   : > { %s3011_s2 = sld [smem:[#allocation26_spill]] }
  0x18   : > { %p2057_p6 = pnand %p1558_p5, %p2996_p1 }
  0x1a   : > { %p2073_p8 = pneg %p2057_p6 }
  0x1d   : > { %s1672_s14 = scalar_lea.hbm %s3011_s2, 64 }
  0x1e   : > { %p1673_p7 = scmp.ne.s32.totalorder %s3011_s2, %s1672_s14  ;;  %p1679_p11 = scmp.lt.u32.totalorder %s1672_s14, %s3011_s2 }
  0x20   : > { %p1675_p9 = pnand %p2073_p8, %p1673_p7 }
  0x22   : > { %p1676_p10 = pneg %p1675_p9 }
  0x24   : > { %p1681_p12 = pnand %p1679_p11, %p1676_p10 }
  0x26   : > { %1684 = shalt.err (!%p1681_p12)
}
  0x27   : > { %s1685_s20 = scalar_lea.vmem %s230_s30, 64  ;;  %p1693_p5 = scmp.lt.s32.totalorder %s230_s30, %s230_s30 }
  0x28   : > { %p1686_p13 = scmp.ne.s32.totalorder %s230_s30, %s1685_s20  ;;  %p1694_p4 = scmp.lt.s32.totalorder %s1685_s20, %s1685_s20 }
  0x2a   : > { %p1688_p0 = pnand %p1686_p13, %p2073_p8  ;;  %p1695_p1 = por %p1694_p4, %p1693_p5 }
  0x2c   : > { %p1689_p2 = pneg %p1688_p0 }
  0x2e   : > { %p1696_p3 = pnand %p1695_p1, %p1689_p2 }
  0x30   : > { %1699 = shalt.err (!%p1696_p3)
}
  0x31   : > { %1561 = dma.hbm_to_vmem [thread:$0]  (!%p2057_p6), %s3011_s2, 64, %s230_s30, [#allocation6]  }
  0x32   : > { %s3013_s3 = sld [smem:[#allocation27_spill]] }
  0x38   : > { %s1700_s13 = scalar_lea.hbm %s3013_s3, 128 }
  0x39   : > { %p1701_p7 = scmp.ne.s32.totalorder %s3013_s3, %s1700_s13  ;;  %p1707_p1 = scmp.lt.u32.totalorder %s1700_s13, %s3013_s3 }
  0x3b   : > { %p1703_p9 = pnand %p1701_p7, %p2073_p8 }
  0x3d   : > { %p1704_p4 = pneg %p1703_p9 }
  0x3f   : > { %p1709_p3 = pnand %p1707_p1, %p1704_p4 }
  0x41   : > { %1712 = shalt.err (!%p1709_p3)
}
  0x42   : > { %s1713_s30 = scalar_lea.vmem %s2061_s8, 128  ;;  %p1721_p13 = scmp.lt.s32.totalorder %s2061_s8, %s2061_s8 }
  0x43   : > { %p1714_p10 = scmp.ne.s32.totalorder %s2061_s8, %s1713_s30  ;;  %p1722_p0 = scmp.lt.s32.totalorder %s1713_s30, %s1713_s30 }
  0x45   : > { %p1716_p11 = pnand %p1714_p10, %p2073_p8  ;;  %p1723_p2 = por %p1722_p0, %p1721_p13 }
  0x47   : > { %p1717_p12 = pneg %p1716_p11 }
  0x49   : > { %p1724_p5 = pnand %p1723_p2, %p1717_p12 }
  0x4b   : > { %1727 = shalt.err (!%p1724_p5)
}
  0x4c   : > { %1564 = dma.hbm_to_vmem [thread:$0]  (!%p2057_p6), %s3013_s3, 128, %s2061_s8, [#allocation9]  }
  0x4d   : > { %s3014_s4 = sld [smem:[#allocation28_spill]] }
  0x53   : > { %s1728_s10 = scalar_lea.hbm %s3014_s4, 32 }
  0x54   : > { %p1729_p7 = scmp.ne.s32.totalorder %s3014_s4, %s1728_s10  ;;  %p1735_p1 = scmp.lt.u32.totalorder %s1728_s10, %s3014_s4 }
  0x56   : > { %p1731_p9 = pnand %p1729_p7, %p2073_p8 }
  0x58   : > { %p1732_p4 = pneg %p1731_p9 }
  0x5a   : > { %p1737_p3 = pnand %p1735_p1, %p1732_p4 }
  0x5c   : > { %1740 = shalt.err (!%p1737_p3)
}
  0x5d   : > { %s1741_s8 = scalar_lea.vmem %s2063_s11, 32  ;;  %p1749_p13 = scmp.lt.s32.totalorder %s2063_s11, %s2063_s11 }
  0x5e   : > { %p1742_p10 = scmp.ne.s32.totalorder %s2063_s11, %s1741_s8  ;;  %p1750_p0 = scmp.lt.s32.totalorder %s1741_s8, %s1741_s8 }
  0x60   : > { %p1744_p11 = pnand %p1742_p10, %p2073_p8  ;;  %p1751_p2 = por %p1750_p0, %p1749_p13 }
  0x62   : > { %p1745_p12 = pneg %p1744_p11 }
  0x64   : > { %p1752_p5 = pnand %p1751_p2, %p1745_p12 }
  0x66   : > { %1755 = shalt.err (!%p1752_p5)
}
  0x67   : > { %1567 = dma.hbm_to_vmem [thread:$0]  (!%p2057_p6), %s3014_s4, 32, %s2063_s11, [#allocation9]  }
  0x68   : > { %s1948_s30 = smov [#allocation11]   ;;  %s3015_s5 = sld [smem:[#allocation29_spill]] }
  0x69   : > { %s262_s19 = sshll.u32 %s1948_s30, 4  ;;  %s263_s19 = int_to_ptr.vmem [resolvable:$true] %s262_s19 }
  0x6e   : > { %s1756_s7 = scalar_lea.hbm %s3015_s5, 64 }
  0x6f   : > { %p1757_p7 = scmp.ne.s32.totalorder %s3015_s5, %s1756_s7  ;;  %p1763_p1 = scmp.lt.u32.totalorder %s1756_s7, %s3015_s5 }
  0x71   : > { %p1759_p9 = pnand %p1757_p7, %p2073_p8 }
  0x73   : > { %p1760_p4 = pneg %p1759_p9 }
  0x75   : > { %p1765_p3 = pnand %p1763_p1, %p1760_p4 }
  0x77   : > { %1768 = shalt.err (!%p1765_p3)
}
  0x78   : > { %s1769_s11 = scalar_lea.vmem %s263_s19, 64  ;;  %p1777_p13 = scmp.lt.s32.totalorder %s263_s19, %s263_s19 }
  0x79   : > { %p1770_p10 = scmp.ne.s32.totalorder %s263_s19, %s1769_s11  ;;  %p1778_p0 = scmp.lt.s32.totalorder %s1769_s11, %s1769_s11 }
  0x7b   : > { %p1772_p11 = pnand %p1770_p10, %p2073_p8  ;;  %p1779_p2 = por %p1778_p0, %p1777_p13 }
  0x7d   : > { %p1773_p12 = pneg %p1772_p11 }
  0x7f   : > { %p1780_p5 = pnand %p1779_p2, %p1773_p12 }
  0x81   : > { %1783 = shalt.err (!%p1780_p5)
}
  0x82   : > { %1570 = dma.hbm_to_vmem [thread:$0]  (!%p2057_p6), %s3015_s5, 64, %s263_s19, [#allocation12]  }
  0x83   : > { %s1499_s17 = sadd.s32 4294967294, %s1943_s26   ;;  %s39_s16 = sadd.s32 1, %s1939_s25 }
  0x84   : > { %p41_p8 = scmp.ge.s32.totalorder %s39_s16, 2  ;;  %s48_s9 = sadd.s32 1, %s1931_s23 }
  0x85   : > { %p55_p7 = scmp.ne.s32.totalorder %s1931_s23, %s1927_s22  ;;  %p56_p9 = scmp.eq.s32.totalorder %s1943_s26, 0 }
  0x86   : > { %s3052_s16 = smov (%p41_p8, %s39_s16), 0  ;;  %p61_p1 = scmp.ne.s32.totalorder %s1927_s22, %s1923_s21 }
  0x87   : > { %p2161_p4 = por %p56_p9, %p55_p7  ;;  %s43_s30 = ssub.s32 %s1939_s25, %s3052_s16 }
  0x88   : > { %p203_p6 = scmp.eq.s32.totalorder %s2043_s27, 1  ;;  %p46_p3 = scmp.eq.s32.totalorder %s43_s30, 0 }
  0x89   : > { %p3017_p10 = scmp.eq.s32.totalorder %s2043_s27, 0  ;;  %p209_p13 = scmp.eq.s32.totalorder %s1499_s17, 1 }
  0x8a   : > { %p2176_p12 = por %p203_p6, %p55_p7  ;;  %p1586_p2 = scmp.lt.s32.totalorder %s1943_s26, 2 }
  0x8b   : > { %p2172_p11 = por %p3017_p10, %p61_p1  ;;  %p2183_p0 = por %p209_p13, %p61_p1 }
  0x8c   : > { %s3019_s20 = scalar_select %p2176_p12, 1, 0 }
  0x8d   : > { %s3018_s19 = scalar_select %p2172_p11, 1, 0 }
  0x8e   : > { %s2181_s29 = scalar_select %p46_p3, %s1931_s23, %s48_s9  }
  0x8f   : > { %s3020_s7 = scalar_select %p2183_p0, 1, 0 }
  0x90   : > { %s2189_s10 = sand.u32 1, %s1931_s23   ;;  %s2998_s12 = smul.u32 224, %s1939_s25 }
  0x91   : > { %s1506_s13 = sshll.u32 %s2189_s10, 3  ;;  %s3021_s0 = sld [smem:[#allocation25_spill]] }
  0x92   : > { %s277_s8 = scalar_lea.vmem [#allocation2], %s1506_s13  ;;  %p2202_p5 = pnand %p1586_p2, %p2161_p4 }
  0x93   : > { %s293_s17 = sshll.u32 %s277_s8, 4  ;;  %s274_s2 = scalar_lea.sflag [#allocation3], %s2189_s10  ;;  %s2206_s17 = int_to_ptr.vmem [resolvable:$true] %s293_s17 }
  0x94   : > { %p1786_p7 = pneg %p2202_p5 }
  0x97   : > { %s2198_s15 = scalar_lea.hbm %s3021_s0, %s2998_s12  ;;  %s1789_s11 = scalar_lea.hbm %s3021_s0, 448 }
  0x98   : > { %s1784_s14 = scalar_lea.hbm %s2198_s15, 128  ;;  %p1790_p4 = scmp.lt.u32.totalorder %s2198_s15, %s3021_s0 }
  0x99   : > { %p1785_p8 = scmp.ne.s32.totalorder %s2198_s15, %s1784_s14  ;;  %p1791_p6 = scmp.lt.u32.totalorder %s1789_s11, %s1784_s14 }
  0x9a   : > { %p1793_p10 = scmp.lt.u32.totalorder %s1784_s14, %s2198_s15 }
  0x9b   : > { %p1787_p9 = pnand %p1786_p7, %p1785_p8  ;;  %p1792_p3 = por %p1791_p6, %p1790_p4 }
  0x9d   : > { %p1788_p1 = pneg %p1787_p9  ;;  %p1794_p13 = por %p1793_p10, %p1792_p3 }
  0x9f   : > { %p1795_p2 = pnand %p1794_p13, %p1788_p1 }
  0xa1   : > { %1798 = shalt.err (!%p1795_p2)
}
  0xa2   : > { %s1799_s30 = scalar_lea.vmem %s2206_s17, 128  ;;  %s1949_s13 = smov [#allocation2]  }
  0xa3   : > { %p1800_p8 = scmp.ne.s32.totalorder %s2206_s17, %s1799_s30  ;;  %s1804_s18 = sshll.u32 %s1949_s13, 4  ;;  %s1805_s18 = int_to_ptr.vmem [resolvable:$false] %s1804_s18 }
  0xa4   : > { %s1806_s12 = scalar_lea.vmem %s1805_s18, 256  ;;  %p1807_p12 = scmp.lt.s32.totalorder %s2206_s17, %s1805_s18 }
  0xa5   : > { %p1802_p9 = pnand %p1800_p8, %p1786_p7  ;;  %p1808_p4 = scmp.lt.s32.totalorder %s1806_s12, %s1799_s30 }
  0xa7   : > { %p1803_p0 = pneg %p1802_p9  ;;  %p1809_p6 = por %p1808_p4, %p1807_p12 }
  0xa9   : > { %p1810_p3 = pnand %p1809_p6, %p1803_p0 }
  0xab   : > { %1813 = shalt.err (!%p1810_p3)
}
  0xac   : > { %1574 = dma.hbm_to_vmem [thread:$0]  (!%p2202_p5), %s2198_s15, 128, %s2206_s17, %s274_s2  }
  0xad   : > { %s1508_s14 = sshll.u32 %s2189_s10, 2  ;;  %s3023_s11 = smul.u32 224, %s1939_s25 }
  0xae   : > { %s304_s30 = scalar_lea.vmem [#allocation5], %s1508_s14  ;;  %s3024_s3 = sand.u32 1, %s1943_s26  }
  0xaf   : > { %s1393_s0 = scalar_lea.hbm %s2990_s1, %s3023_s11  ;;  %s322_s12 = sshll.u32 %s304_s30, 4  ;;  %s323_s12 = int_to_ptr.vmem [resolvable:$true] %s322_s12 }
  0xb0   : > { %s2241_s18 = scalar_lea.hbm %s1393_s0, 128  ;;  %s301_s4 = scalar_lea.sflag [#allocation6], %s3024_s3 }
  0xb1   : > { %s1844_s5 = scalar_lea.hbm %s1393_s0, 192  ;;  %s1819_s15 = scalar_lea.hbm %s2990_s1, 448 }
  0xb2   : > { %p1815_p12 = scmp.ne.s32.totalorder %s2241_s18, %s1844_s5  ;;  %p1820_p10 = scmp.lt.u32.totalorder %s2241_s18, %s2990_s1 }
  0xb3   : > { %p1821_p13 = scmp.lt.u32.totalorder %s1819_s15, %s1844_s5  ;;  %p1823_p8 = scmp.lt.u32.totalorder %s1844_s5, %s2241_s18 }
  0xb4   : > { %p1817_p0 = pnand %p1815_p12, %p1786_p7 }
  0xb5   : > { %p1822_p2 = por %p1821_p13, %p1820_p10 }
  0xb6   : > { %p1818_p1 = pneg %p1817_p0 }
  0xb7   : > { %p1824_p9 = por %p1823_p8, %p1822_p2 }
  0xb9   : > { %p1825_p4 = pnand %p1824_p9, %p1818_p1 }
  0xbb   : > { %1828 = shalt.err (!%p1825_p4)
}
  0xbc   : > { %s1829_s0 = scalar_lea.vmem %s323_s12, 64  ;;  %s1950_s3 = smov [#allocation5]  }
  0xbd   : > { %p1830_p6 = scmp.ne.s32.totalorder %s323_s12, %s1829_s0  ;;  %s1834_s14 = sshll.u32 %s1950_s3, 4  ;;  %s1835_s14 = int_to_ptr.vmem [resolvable:$false] %s1834_s14 }
  0xbe   : > { %s1836_s8 = scalar_lea.vmem %s1835_s14, 128  ;;  %p1837_p0 = scmp.lt.s32.totalorder %s323_s12, %s1835_s14 }
  0xbf   : > { %p1832_p3 = pnand %p1830_p6, %p1786_p7  ;;  %p1838_p11 = scmp.lt.s32.totalorder %s1836_s8, %s1829_s0 }
  0xc1   : > { %p1833_p12 = pneg %p1832_p3  ;;  %p1839_p10 = por %p1838_p11, %p1837_p0 }
  0xc3   : > { %p1840_p13 = pnand %p1839_p10, %p1833_p12 }
  0xc5   : > { %1843 = shalt.err (!%p1840_p13)
}
  0xc6   : > { %1577 = dma.hbm_to_vmem [thread:$0]  (!%p2202_p5), %s2241_s18, 64, %s323_s12, %s301_s4  }
  0xc7   : > { %p3025_p1 = scmp.ne.s32.totalorder %s3009_s28, 0 }
  0xc9   : > { %331 = sbr.rel (%p3025_p1) target bundleno = 1069 (0x42d), region = 44 }
  0xd0   : > { %s2266_s5 = sand.u32 1, %s1927_s22   ;;  %p3026_p11 = scmp.ne.s32.totalorder %s3018_s19, 0 }
  0xd1   : > { %s1511_s13 = sshll.u32 %s2266_s5, 3  ;;  %s334_s30 = scalar_lea.sflag [#allocation3], %s2266_s5 }
  0xd2   : > { %s337_s2 = scalar_lea.vmem [#allocation2], %s1511_s13 }
  0xd3   : > { %1898 = dma.done.wait (%p3026_p11), %s334_s30, 128  }
  0xd4   : > { %1900 = vsyncadd (%p3026_p11), %s334_s30, 4294967168  ;;  %s342_s4 = sand.u32 1, %s2043_s27   ;;  %s1512_s28 = sshll.u32 %s2266_s5, 2 }
  0xd5   : > { %s343_s9 = scalar_lea.sflag [#allocation6], %s342_s4  ;;  %s346_s18 = scalar_lea.vmem [#allocation5], %s1512_s28 }
  0xd6   : > { %1902 = dma.done.wait (%p3026_p11), %s343_s9, 64  }
  0xd7   : > { %1904 = vsyncadd (%p3026_p11), %s343_s9, 4294967232  ;;  %p3027_p5 = scmp.eq.s32.totalorder %s2043_s27, 0 }
  0xd9   : > { %1906 = dma.done.wait (%p3027_p5), [#allocation6], 64   ;;  %p3028_p7 = pmov %p3027_p5 }
  0xda   : > { %p3029_p2 = pmov %p3027_p5 }
  0xdb   : > { %1908 = vsyncadd (%p3028_p7), [#allocation6], 4294967232 }
  0xdc   : > { %1910 = dma.done.wait (%p3029_p2), [#allocation9], 160   ;;  %p3030_p8 = pmov %p3029_p2 }
  0xdd   : > { %p3031_p9 = pmov %p3029_p2 }
  0xde   : > { %1912 = vsyncadd (%p3030_p8), [#allocation9], 4294967136 }
  0xdf   : > { %1914 = dma.done.wait (%p3031_p9), [#allocation12], 64   ;;  %p3032_p4 = pmov %p3029_p2 }
  0xe0   : > { %v417_v0 = vlaneseq  ;;  %v1951_v1 = vmov 1983009808   ;;  %v2296_v6 = vld.sshfl [vmem:[%s346_s18] sm:$0x33 pattern:$0x76325410] }
  0xe1   : > { %1916 = vsyncadd (%p3032_p4), [#allocation12], 4294967232  ;;  %v415_v2 = vunpack.c.l.s4 %v1951_v1  ;;  %v410_v7 = vld [vmem:[%s337_s2] sm:$0xff]  ;;  %v2299_v8 = vrot.slane %v2296_v6, 6  ;;  %s1952_s19 = smov 127   ;;  %s1953_s27 = smov 49   ;;  %v438_v17 = vcombine.high %v2296_v6, %v2296_v6 }
  0xe2   : > { %v418_v3 = vshrl.u32 %v417_v0, 7  ;;  %v413_v10 = vcombine.high %v410_v7, %v410_v7  ;;  %v2340_v20 = vrot.slane %v2296_v6, 4  ;;  %s1954_s12 = smov 48   ;;  %v2352_v23 = vrot.slane %v2296_v6, 2  ;;  %s1955_s10 = smov 47  }
  0xe3   : > { %v416_v4 = vunpack.c.0.s8 %v415_v2  ;;  %452 = vrot.lane.b32.xlu1 %v2299_v8, %s1952_s19  ;;  %v826_v25 = vrot.slane %v438_v17, 2  ;;  %s1956_s15 = smov 39   ;;  %v857_v26 = vrot.slane %v438_v17, 6  ;;  %s1957_s17 = smov 38   ;;  %vm454_vm0 = vcmask 1039360  }
  0xe4   : > { %s1958_s11 = smov 37   ;;  %s1959_s0 = smov 28   ;;  %vm679_vm1 = vcmask 1041408   ;;  %vm821_vm2 = vcmask 400384   ;;  %vm837_vm3 = vcmask 392192   ;;  %vm692_vm4 = vcmask 1043456  }
  0xe5   : > { %v2294_v5 = vsub.s32 %v416_v4, %v418_v3  ;;  %s1960_s3 = smov 29   ;;  %s1961_s14 = smov 27   ;;  %vm701_vm5 = vcmask 1045504   ;;  %vm852_vm6 = vcmask 384000   ;;  %vm868_vm7 = vcmask 318464  }
  0xe6   : > { %s1962_s8 = smov 126   ;;  %s1963_s30 = smov 118   ;;  %vm883_vm8 = vcmask 310272   ;;  %vm898_vm9 = vcmask 302080   ;;  %vm474_vm10 = vcmask 1031168   ;;  %vm494_vm11 = vcmask 965632  }
  0xe7   : > { %3033 = vst [vmem:[#allocation20_spill] sm:$0xff] %v2294_v5  ;;  %v2302_v9 = vrot.slane %v410_v7, %v2294_v5  ;;  %v2309_v12 = vrot.slane %v413_v10, %v2294_v5  ;;  %s1964_s2 = smov 117   ;;  %s1965_s4 = smov 116   ;;  %vm913_vm12 = vcmask 236544   ;;  %vm599_vm13 = vcmask 220160  }
  0xe8   : > { %s1966_s28 = smov 108   ;;  %s1967_s9 = smov 107   ;;  %vm584_vm14 = vcmask 228352   ;;  %vm524_vm15 = vcmask 949248  }
  0xe9   : > { %v2306_v11 = vrot.slane %v2302_v9, 6  ;;  %v2313_v13 = vcombine.high %v2302_v9, %v2302_v9  ;;  %v2321_v15 = vcombine.high %v2309_v12, %v2309_v12  ;;  %v2326_v16 = vrot.slane %v2309_v12, 6  ;;  %s1968_s18 = smov 106   ;;  %p3043_p3 = scmp.ne.s32.totalorder %s3019_s20, 0 }
  0xea   : > { %v2333_v18 = vrot.slane %v2309_v12, 4  ;;  %v2344_v21 = vrot.slane %v2309_v12, 2  ;;  %v2403_v27 = vrot.slane %v2302_v9, 4  ;;  %v2409_v28 = vrot.slane %v2302_v9, 2 }
  0xeb   : > { %444 = vrot.lane.b32.xlu0 %v2306_v11, %s1952_s19  ;;  %v2317_v14 = vrot.slane %v2313_v13, 6  ;;  %811 = vrot.lane.b32.xlu1 %v2313_v13, %s1953_s27  ;;  %v2336_v19 = vrot.slane %v2321_v15, 6  ;;  %v2348_v22 = vrot.slane %v2313_v13, 2  ;;  %v2356_v24 = vrot.slane %v2321_v15, 2 }
  0xef   : > { %446 = vrot.lane.b32.xlu0 %v2317_v14, %s1952_s19  ;;  %815 = vrot.lane.b32.xlu1 %v2321_v15, %s1953_s27 }
  0xf3   : > { %448 = vrot.lane.b32.xlu0 %v2326_v16, %s1952_s19  ;;  %819 = vrot.lane.b32.xlu1 %v438_v17, %s1953_s27 }
  0xf7   : > { %813 = vrot.lane.b32.xlu0 %v2333_v18, %s1953_s27  ;;  %450 = vrot.lane.b32.xlu1 %v2336_v19, %s1952_s19  ;;  %s1969_s19 = smov 26  }
  0xfb   : > { %817 = vrot.lane.b32.xlu0 %v2340_v20, %s1953_s27  ;;  %829 = vrot.lane.b32.xlu1 %v2344_v21, %s1954_s12  ;;  %s1970_s27 = smov 18  }
  0xff   : > { %827 = vrot.lane.b32.xlu0 %v2348_v22, %s1954_s12  ;;  %833 = vrot.lane.b32.xlu1 %v2352_v23, %s1954_s12 }
 0x103   : > { %831 = vrot.lane.b32.xlu0 %v2356_v24, %s1954_s12  ;;  %842 = vrot.lane.b32.xlu1 %v2313_v13, %s1955_s10 }
 0x107   : > { %835 = vrot.lane.b32.xlu0 %v826_v25, %s1954_s12  ;;  %846 = vrot.lane.b32.xlu1 %v2321_v15, %s1955_s10  ;;  %s1971_s12 = smov 17  }
 0x10b   : > { %844 = vrot.lane.b32.xlu0 %v2309_v12, %s1955_s10  ;;  %850 = vrot.lane.b32.xlu1 %v438_v17, %s1955_s10 }
 0x10f   : > { %848 = vrot.lane.b32.xlu0 %v2296_v6, %s1955_s10  ;;  %860 = vrot.lane.b32.xlu1 %v2326_v16, %s1956_s15  ;;  %s1972_s10 = smov 16  }
 0x113   : > { %858 = vrot.lane.b32.xlu0 %v2317_v14, %s1956_s15  ;;  %864 = vrot.lane.b32.xlu1 %v2299_v8, %s1956_s15 }
 0x117   : > { %862 = vrot.lane.b32.xlu0 %v2336_v19, %s1956_s15  ;;  %873 = vrot.lane.b32.xlu1 %v2313_v13, %s1957_s17 }
 0x11b   : > { %866 = vrot.lane.b32.xlu0 %v857_v26, %s1956_s15  ;;  %877 = vrot.lane.b32.xlu1 %v2321_v15, %s1957_s17  ;;  %s1973_s15 = smov 8  }
 0x11f   : > { %875 = vrot.lane.b32.xlu0 %v2333_v18, %s1957_s17  ;;  %881 = vrot.lane.b32.xlu1 %v438_v17, %s1957_s17 }
 0x123   : > { %879 = vrot.lane.b32.xlu0 %v2340_v20, %s1957_s17  ;;  %890 = vrot.lane.b32.xlu1 %v2344_v21, %s1958_s11  ;;  %s1974_s17 = smov 7  }
 0x127   : > { %888 = vrot.lane.b32.xlu0 %v2348_v22, %s1958_s11  ;;  %894 = vrot.lane.b32.xlu1 %v2352_v23, %s1958_s11 }
 0x12b   : > { %892 = vrot.lane.b32.xlu0 %v2356_v24, %s1958_s11  ;;  %576 = vrot.lane.b32.xlu1 %v2317_v14, %s1959_s0 }
 0x12f   : > { %896 = vrot.lane.b32.xlu0 %v826_v25, %s1958_s11  ;;  %580 = vrot.lane.b32.xlu1 %v2336_v19, %s1959_s0  ;;  %s1534_s11 = sshll.u32 %s1935_s24, 7  ;;  %s1333_s24 = scalar_lea.sflag [#allocation4], %s2266_s5 }
 0x133   : > { %578 = vrot.lane.b32.xlu0 %v2326_v16, %s1959_s0  ;;  %903 = vrot.lane.b32.xlu1 %v2313_v13, %s1960_s3 }
 0x137   : > { %582 = vrot.lane.b32.xlu0 %v2299_v8, %s1959_s0  ;;  %907 = vrot.lane.b32.xlu1 %v2321_v15, %s1960_s3 }
 0x13b   : > { %905 = vrot.lane.b32.xlu0 %v2309_v12, %s1960_s3  ;;  %911 = vrot.lane.b32.xlu1 %v438_v17, %s1960_s3 }
 0x13f   : > { %909 = vrot.lane.b32.xlu0 %v2296_v6, %s1960_s3  ;;  %591 = vrot.lane.b32.xlu1 %v2313_v13, %s1961_s14 }
 0x143   : > { %918 = vrot.lane.b32.xlu0 %v857_v26, %s1959_s0  ;;  %595 = vrot.lane.b32.xlu1 %v2321_v15, %s1961_s14 }
 0x147   : > { %593 = vrot.lane.b32.xlu0 %v2333_v18, %s1961_s14  ;;  %921 = vrot.lane.b32.xlu1 %v438_v17, %s1961_s14 }
 0x14b   : > { %597 = vrot.lane.b32.xlu0 %v2340_v20, %s1961_s14  ;;  %468 = vrot.lane.b32.xlu1 %v2333_v18, %s1962_s8 }
 0x14f   : > { %466 = vrot.lane.b32.xlu0 %v2313_v13, %s1962_s8  ;;  %472 = vrot.lane.b32.xlu1 %v2340_v20, %s1962_s8 }
 0x153   : > { %470 = vrot.lane.b32.xlu0 %v2321_v15, %s1962_s8  ;;  %486 = vrot.lane.b32.xlu1 %v2348_v22, %s1963_s30 }
 0x155   : > { %v2411_v29 = vpop.permute.xlu1 %452 }
 0x157   : > { %464 = vrot.lane.b32.xlu0 %v2403_v27, %s1962_s8  ;;  %490 = vrot.lane.b32.xlu1 %v2356_v24, %s1963_s30 }
 0x15b   : > { %488 = vrot.lane.b32.xlu0 %v2344_v21, %s1963_s30  ;;  %484 = vrot.lane.b32.xlu1 %v2409_v28, %s1963_s30 }
 0x15d   : > { %v2414_v30 = vpop.permute.xlu0 %444  ;;  %v2417_v31 = vpop.permute.xlu1 %811 }
 0x15f   : > { %492 = vrot.lane.b32.xlu0 %v2352_v23, %s1963_s30  ;;  %503 = vrot.lane.b32.xlu1 %v2309_v12, %s1964_s2  ;;  %s2940_s30 = scalar_lea.hbm %s2995_s6, %s1534_s11 }
 0x161   : > { %v2420_v32 = vpop.permute.xlu0 %446  ;;  %v2423_v33 = vpop.permute.xlu1 %815 }
 0x163   : > { %501 = vrot.lane.b32.xlu0 %v2313_v13, %s1964_s2  ;;  %507 = vrot.lane.b32.xlu1 %v2296_v6, %s1964_s2 }
 0x165   : > { %v2426_v34 = vpop.permute.xlu0 %448  ;;  %v2429_v35 = vpop.permute.xlu1 %819 }
 0x167   : > { %505 = vrot.lane.b32.xlu0 %v2321_v15, %s1964_s2  ;;  %518 = vrot.lane.b32.xlu1 %v2326_v16, %s1965_s4 }
 0x169   : > { %v2432_v36 = vpop.permute.xlu0 %813  ;;  %v2436_v37 = vpop.permute.xlu1 %450 }
 0x16a   : > { %v457_v5 = vsel %vm454_vm0, %v2426_v34, %v2436_v37 }
 0x16b   : > { %516 = vrot.lane.b32.xlu0 %v2317_v14, %s1965_s4  ;;  %522 = vrot.lane.b32.xlu1 %v2299_v8, %s1965_s4 }
 0x16d   : > { %v2438_v38 = vpop.permute.xlu0 %817  ;;  %v2442_v39 = vpop.permute.xlu1 %829 }
 0x16f   : > { %520 = vrot.lane.b32.xlu0 %v2336_v19, %s1965_s4  ;;  %514 = vrot.lane.b32.xlu1 %v2306_v11, %s1965_s4 }
 0x171   : > { %v2444_v40 = vpop.permute.xlu0 %827  ;;  %v2448_v41 = vpop.permute.xlu1 %833 }
 0x173   : > { %499 = vrot.lane.b32.xlu0 %v2302_v9, %s1964_s2  ;;  %533 = vrot.lane.b32.xlu1 %v2333_v18, %s1966_s28 }
 0x175   : > { %v2450_v42 = vpop.permute.xlu0 %831  ;;  %v2454_v43 = vpop.permute.xlu1 %842 }
 0x177   : > { %531 = vrot.lane.b32.xlu0 %v2313_v13, %s1966_s28  ;;  %537 = vrot.lane.b32.xlu1 %v2340_v20, %s1966_s28 }
 0x179   : > { %v2456_v44 = vpop.permute.xlu0 %835  ;;  %v2460_v45 = vpop.permute.xlu1 %846 }
 0x17b   : > { %535 = vrot.lane.b32.xlu0 %v2321_v15, %s1966_s28  ;;  %546 = vrot.lane.b32.xlu1 %v2348_v22, %s1967_s9 }
 0x17d   : > { %v2462_v46 = vpop.permute.xlu0 %844  ;;  %v2466_v47 = vpop.permute.xlu1 %850 }
 0x17f   : > { %529 = vrot.lane.b32.xlu0 %v2403_v27, %s1966_s28  ;;  %550 = vrot.lane.b32.xlu1 %v2356_v24, %s1967_s9 }
 0x181   : > { %v2468_v48 = vpop.permute.xlu0 %848  ;;  %v2472_v49 = vpop.permute.xlu1 %860 }
 0x183   : > { %548 = vrot.lane.b32.xlu0 %v2344_v21, %s1967_s9  ;;  %544 = vrot.lane.b32.xlu1 %v2409_v28, %s1967_s9 }
 0x185   : > { %v2474_v50 = vpop.permute.xlu0 %858  ;;  %v2478_v51 = vpop.permute.xlu1 %864 }
 0x187   : > { %552 = vrot.lane.b32.xlu0 %v2352_v23, %s1967_s9  ;;  %563 = vrot.lane.b32.xlu1 %v2309_v12, %s1968_s18 }
 0x189   : > { %v2480_v52 = vpop.permute.xlu0 %862  ;;  %v2484_v53 = vpop.permute.xlu1 %873 }
 0x18b   : > { %561 = vrot.lane.b32.xlu0 %v2313_v13, %s1968_s18  ;;  %567 = vrot.lane.b32.xlu1 %v2296_v6, %s1968_s18 }
 0x18d   : > { %v2486_v54 = vpop.permute.xlu0 %866  ;;  %v2490_v55 = vpop.permute.xlu1 %877 }
 0x18f   : > { %565 = vrot.lane.b32.xlu0 %v2321_v15, %s1968_s18  ;;  %574 = vrot.lane.b32.xlu1 %v2306_v11, %s1959_s0  ;;  %s395_s0 = scalar_lea.vmem [#allocation13], %s1511_s13  ;;  %s1976_s13 = smov [#allocation13]  }
 0x190   : > { %s1349_s3 = sshll.u32 %s395_s0, 4  ;;  %s1849_s4 = sshll.u32 %s1976_s13, 4  ;;  %s2942_s3 = int_to_ptr.vmem [resolvable:$true] %s1349_s3  ;;  %s1850_s4 = int_to_ptr.vmem [resolvable:$false] %s1849_s4 }
 0x191   : > { %v2492_v56 = vpop.permute.xlu0 %875  ;;  %v2497_v57 = vpop.permute.xlu1 %881  ;;  %s1845_s2 = scalar_lea.vmem %s2942_s3, 128  ;;  %s1851_s28 = scalar_lea.vmem %s1850_s4, 256 }
 0x192   : > { %p1846_p6 = scmp.ne.s32.totalorder %s2942_s3, %s1845_s2  ;;  %p1852_p10 = scmp.lt.s32.totalorder %s2942_s3, %s1850_s4 }
 0x193   : > { %559 = vrot.lane.b32.xlu0 %v2302_v9, %s1968_s18  ;;  %606 = vrot.lane.b32.xlu1 %v2348_v22, %s1969_s19  ;;  %p1853_p13 = scmp.lt.s32.totalorder %s1851_s28, %s1845_s2 }
 0x194   : > { %p1847_p12 = pnand %p1846_p6, %p3043_p3 }
 0x195   : > { %v2499_v58 = vpop.permute.xlu0 %879  ;;  %v2504_v59 = vpop.permute.xlu1 %890  ;;  %p1854_p1 = por %p1853_p13, %p1852_p10 }
 0x196   : > { %p1848_p0 = pneg %p1847_p12 }
 0x197   : > { %589 = vrot.lane.b32.xlu0 %v2403_v27, %s1961_s14  ;;  %610 = vrot.lane.b32.xlu1 %v2356_v24, %s1969_s19 }
 0x198   : > { %p1855_p11 = pnand %p1854_p1, %p1848_p0 }
 0x199   : > { %v2506_v60 = vpop.permute.xlu0 %888  ;;  %v2510_v61 = vpop.permute.xlu1 %894 }
 0x19b   : > { %608 = vrot.lane.b32.xlu0 %v2344_v21, %s1969_s19  ;;  %604 = vrot.lane.b32.xlu1 %v2409_v28, %s1969_s19 }
 0x19d   : > { %v2512_v62 = vpop.permute.xlu0 %892  ;;  %v2516_v63 = vpop.permute.xlu1 %576 }
 0x19f   : > { %612 = vrot.lane.b32.xlu0 %v2352_v23, %s1969_s19  ;;  %623 = vrot.lane.b32.xlu1 %v2309_v12, %s1970_s27 }
 0x1a1   : > { %v2518_v0 = vpop.permute.xlu0 %896  ;;  %v2522_v1 = vpop.permute.xlu1 %580 }
 0x1a2   : > { %3034 = vst [vmem:[#allocation21_spill] sm:$0xff] %v2522_v1 }
 0x1a3   : > { %621 = vrot.lane.b32.xlu0 %v2313_v13, %s1970_s27  ;;  %627 = vrot.lane.b32.xlu1 %v2296_v6, %s1970_s27 }
 0x1a5   : > { %v2524_v2 = vpop.permute.xlu0 %578  ;;  %v2528_v3 = vpop.permute.xlu1 %903 }
 0x1a7   : > { %625 = vrot.lane.b32.xlu0 %v2321_v15, %s1970_s27  ;;  %638 = vrot.lane.b32.xlu1 %v2326_v16, %s1971_s12 }
 0x1a9   : > { %v2530_v4 = vpop.permute.xlu0 %582  ;;  %v2534_v7 = vpop.permute.xlu1 %907 }
 0x1ab   : > { %636 = vrot.lane.b32.xlu0 %v2317_v14, %s1971_s12  ;;  %642 = vrot.lane.b32.xlu1 %v2299_v8, %s1971_s12 }
 0x1ad   : > { %v2536_v10 = vpop.permute.xlu0 %905  ;;  %v2540_v17 = vpop.permute.xlu1 %911 }
 0x1ae   : > { %3035 = vst [vmem:[#allocation22_spill] sm:$0xff] %v2540_v17  ;;  %v2579_v17 = vsel %vm679_vm1, %v2309_v12, %v457_v5  ;;  %v822_v5 = vsel %vm821_vm2, %v2417_v31, %v2432_v36  ;;  %v823_v12 = vsel %vm821_vm2, %v2432_v36, %v2423_v33 }
 0x1af   : > { %640 = vrot.lane.b32.xlu0 %v2336_v19, %s1971_s12  ;;  %634 = vrot.lane.b32.xlu1 %v2306_v11, %s1971_s12 }
 0x1b1   : > { %v2542_v25 = vpop.permute.xlu0 %909  ;;  %v2546_v26 = vpop.permute.xlu1 %591 }
 0x1b3   : > { %619 = vrot.lane.b32.xlu0 %v2302_v9, %s1970_s27  ;;  %653 = vrot.lane.b32.xlu1 %v2333_v18, %s1972_s10 }
 0x1b5   : > { %v2548_v16 = vpop.permute.xlu0 %918  ;;  %v2552_v8 = vpop.permute.xlu1 %595 }
 0x1b6   : > { %3036 = vst [vmem:[#allocation23_spill] sm:$0xff] %v2548_v16 }
 0x1b7   : > { %651 = vrot.lane.b32.xlu0 %v2313_v13, %s1972_s10  ;;  %657 = vrot.lane.b32.xlu1 %v2340_v20, %s1972_s10 }
 0x1b9   : > { %v2554_v14 = vpop.permute.xlu0 %593  ;;  %v2558_v11 = vpop.permute.xlu1 %921 }
 0x1ba   : > { %3037 = vst [vmem:[#allocation24_spill] sm:$0xff] %v2558_v11  ;;  %v839_v11 = vsel %vm837_vm3, %v2442_v39, %v2450_v42 }
 0x1bb   : > { %655 = vrot.lane.b32.xlu0 %v2321_v15, %s1972_s10  ;;  %666 = vrot.lane.b32.xlu1 %v2348_v22, %s1973_s15 }
 0x1bd   : > { %v2560_v19 = vpop.permute.xlu0 %597  ;;  %v2565_v18 = vpop.permute.xlu1 %468 }
 0x1bf   : > { %649 = vrot.lane.b32.xlu0 %v2403_v27, %s1972_s10  ;;  %670 = vrot.lane.b32.xlu1 %v2356_v24, %s1973_s15  ;;  %v455_v27 = vsel %vm454_vm0, %v2414_v30, %v2420_v32  ;;  %v456_v24 = vsel %vm454_vm0, %v2420_v32, %v2426_v34  ;;  %v825_v32 = vsel %vm821_vm2, %v2438_v38, %v2429_v35 }
 0x1c0   : > { %v838_v34 = vsel %vm837_vm3, %v2444_v40, %v2442_v39  ;;  %v682_v36 = vsel %vm679_vm1, %v2302_v9, %v455_v27  ;;  %v685_v16 = vsel %vm679_vm1, %v2313_v13, %v456_v24  ;;  %v824_v39 = vsel %vm821_vm2, %v2423_v33, %v2438_v38 }
 0x1c1   : > { %v467_v20 = vpop.permute.xlu0 %466  ;;  %v473_v22 = vpop.permute.xlu1 %472  ;;  %v840_v9 = vsel %vm837_vm3, %v2450_v42, %v2448_v41  ;;  %v841_v13 = vsel %vm837_vm3, %v2448_v41, %v2456_v44  ;;  %vm509_vm2 = vcmask 957440   ;;  %vm554_vm3 = vcmask 875520  }
 0x1c2   : > { %v476_v41 = vsel %vm474_vm10, %v467_v20, %v2565_v18 }
 0x1c3   : > { %668 = vrot.lane.b32.xlu0 %v2344_v21, %s1973_s15  ;;  %v458_v21 = vsel %vm454_vm0, %v2436_v37, %v2411_v29  ;;  %664 = vrot.lane.b32.xlu1 %v2409_v28, %s1973_s15  ;;  %v932_v37 = vsel %vm692_vm4, %v2579_v17, %v823_v12  ;;  %v899_v12 = vsel %vm898_vm9, %v2506_v60, %v2504_v59  ;;  %vm539_vm0 = vcmask 883712  }
 0x1c4   : > { %v691_v35 = vsel %vm679_vm1, %v2321_v15, %v458_v21  ;;  %v942_v1 = vsel %vm701_vm5, %v932_v37, %v839_v11  ;;  %v930_v15 = vsel %vm692_vm4, %v685_v16, %v822_v5  ;;  %v853_v11 = vsel %vm852_vm6, %v2454_v43, %v2462_v46 }
 0x1c5   : > { %v471_v30 = vpop.permute.xlu0 %470  ;;  %v487_v28 = vpop.permute.xlu1 %486  ;;  %v940_v33 = vsel %vm701_vm5, %v930_v15, %v838_v34  ;;  %v934_v44 = vsel %vm692_vm4, %v691_v35, %v824_v39  ;;  %v854_v5 = vsel %vm852_vm6, %v2462_v46, %v2460_v45  ;;  %v871_v39 = vsel %vm868_vm7, %v2480_v52, %v2478_v51 }
 0x1c6   : > { %v944_v21 = vsel %vm701_vm5, %v934_v44, %v840_v9  ;;  %v478_v9 = vsel %vm474_vm10, %v471_v30, %v473_v22  ;;  %v477_v15 = vsel %vm474_vm10, %v2565_v18, %v471_v30  ;;  %v870_v22 = vsel %vm868_vm7, %v2472_v49, %v2480_v52 }
 0x1c7   : > { %672 = vrot.lane.b32.xlu0 %v2352_v23, %s1973_s15  ;;  %v926_v23 = vsel %vm679_vm1, %v2296_v6, %v2411_v29  ;;  %1020 = vrot.lane.b32.xlu1 %v942_v1, %s1974_s17  ;;  %v928_v6 = vsel %vm692_vm4, %v682_v36, %v2417_v31  ;;  %v869_v29 = vsel %vm868_vm7, %v2474_v50, %v2472_v49 }
 0x1c8   : > { %v936_v38 = vsel %vm692_vm4, %v926_v23, %v825_v32  ;;  %v938_v1 = vsel %vm701_vm5, %v928_v6, %v2444_v40  ;;  %v884_v31 = vsel %vm883_vm8, %v2484_v53, %v2492_v56  ;;  %v855_v40 = vsel %vm852_vm6, %v2460_v45, %v2468_v48 }
 0x1c9   : > { %v465_v27 = vpop.permute.xlu0 %464  ;;  %v491_v42 = vpop.permute.xlu1 %490  ;;  %v946_v24 = vsel %vm701_vm5, %v936_v38, %v841_v13  ;;  %v952_v37 = vsel %vm679_vm1, %v853_v11, %v869_v29  ;;  %v696_v23 = vsel %vm692_vm4, %v685_v16, %v476_v41  ;;  %v886_v45 = vsel %vm883_vm8, %v2490_v55, %v2499_v58 }
 0x1ca   : > { %v475_v32 = vsel %vm474_vm10, %v465_v27, %v467_v20  ;;  %v965_v27 = vsel %vm692_vm4, %v952_v37, %v884_v31  ;;  %v901_v6 = vsel %vm898_vm9, %v2512_v62, %v2510_v61  ;;  %v958_v30 = vsel %vm679_vm1, %v855_v40, %v871_v39 }
 0x1cb   : > { %1018 = vrot.lane.b32.xlu0 %v940_v33, %s1974_s17  ;;  %1024 = vrot.lane.b32.xlu1 %v946_v24, %s1974_s17  ;;  %v975_v16 = vsel %vm701_vm5, %v965_v27, %v899_v12  ;;  %v694_v38 = vsel %vm692_vm4, %v682_v36, %v475_v32  ;;  %v700_v49 = vsel %vm692_vm4, %v691_v35, %v478_v9  ;;  %v1975_v12 = vmov 0  }
 0x1cc   : > { %v900_v52 = vsel %vm898_vm9, %v2504_v59, %v2512_v62  ;;  %v969_v31 = vsel %vm692_vm4, %v958_v30, %v886_v45  ;;  %v872_v59 = vsel %vm868_vm7, %v2478_v51, %v2486_v54  ;;  %v887_v24 = vsel %vm883_vm8, %v2499_v58, %v2497_v57  ;;  %1122 = vmatprep.mubr.bf16.mxu0 %v1975_v12 }
 0x1cd   : > { %v489_v34 = vpop.permute.xlu0 %488  ;;  %v485_v20 = vpop.permute.xlu1 %484  ;;  %v979_v35 = vsel %vm701_vm5, %v969_v31, %v901_v6  ;;  %v856_v51 = vsel %vm852_vm6, %v2468_v48, %v2466_v47  ;;  %v914_v57 = vsel %vm913_vm12, %v2528_v3, %v2536_v10  ;;  %v2741_v48 = vsel %vm599_vm13, %v2546_v26, %v2554_v14  ;;  %1163 = vmatprep.mubr.bf16.mxu1 %v1975_v12 }
 0x1ce   : > { %v496_v46 = vsel %vm494_vm11, %v487_v28, %v489_v34  ;;  %v495_v33 = vsel %vm494_vm11, %v485_v20, %v487_v28  ;;  %v497_v29 = vsel %vm494_vm11, %v489_v34, %v491_v42  ;;  %v885_v28 = vsel %vm883_vm8, %v2492_v56, %v2490_v55  ;;  %1669 = vset.pattern.permute.xlu1 %v1975_v12 }
 0x1cf   : > { %1022 = vrot.lane.b32.xlu0 %v944_v21, %s1974_s17  ;;  %v706_v13 = vsel %vm701_vm5, %v696_v23, %v496_v46  ;;  %1028 = vrot.lane.b32.xlu1 %v975_v16, %s1974_s17  ;;  %v703_v18 = vsel %vm701_vm5, %v694_v38, %v495_v33  ;;  %v698_v55 = vsel %vm692_vm4, %v2579_v17, %v477_v15  ;;  %v3038_v23 = vld [vmem:[#allocation21_spill] sm:$0xff]  ;;  %v3039_v16 = vld [vmem:[#allocation23_spill] sm:$0xff]  ;;  %vm569_vm6 = vcmask 867328  }
 0x1d0   : > { %1090 = vmatprep.subr.bf16.mxu0 %v706_v13  ;;  %v955_v56 = vsel %vm679_vm1, %v854_v5, %v870_v22  ;;  %v949_v17 = vsel %vm679_vm1, %v2454_v43, %v2474_v50  ;;  %v902_v5 = vsel %vm898_vm9, %v2510_v61, %v2518_v0  ;;  %v961_v50 = vsel %vm679_vm1, %v856_v51, %v872_v59  ;;  %v1068_v38 = vld [vmem:[#allocation8] sm:$0xff] }
 0x1d1   : > { %v493_v41 = vpop.permute.xlu0 %492  ;;  %1091 = vmatpush1.bf16.msra.mxu0 %v703_v18  ;;  %v2698_v44 = vpop.permute.xlu1 %503  ;;  %v963_v54 = vsel %vm692_vm4, %v949_v17, %v2484_v53  ;;  %v971_v58 = vsel %vm692_vm4, %v961_v50, %v887_v24  ;;  %v2750_v61 = vsel %vm584_vm14, %v2516_v63, %v2524_v2  ;;  %v916_v32 = vsel %vm913_vm12, %v2534_v7, %v2542_v25  ;;  %v3040_v22 = vld [vmem:[#allocation24_spill] sm:$0xff] }
 0x1d2   : > { %v498_v36 = vsel %vm494_vm11, %v491_v42, %v493_v41  ;;  %v709_v42 = vsel %vm701_vm5, %v698_v55, %v497_v29  ;;  %v973_v47 = vsel %vm701_vm5, %v963_v54, %v2506_v60  ;;  %v981_v0 = vsel %vm701_vm5, %v971_v58, %v902_v5  ;;  %1670 = vset.pattern.permute.xlu0 %v1975_v12  ;;  %v3041_v29 = vld [vmem:[#allocation22_spill] sm:$0xff] }
 0x1d3   : > { %1016 = vrot.lane.b32.xlu0 %v938_v1, %s1974_s17  ;;  %v712_v11 = vsel %vm701_vm5, %v700_v49, %v498_v36  ;;  %1032 = vrot.lane.b32.xlu1 %v979_v35, %s1974_s17  ;;  %v967_v1 = vsel %vm692_vm4, %v955_v56, %v885_v28  ;;  %v986_v60 = vsel %vm679_vm1, %v914_v57, %v2750_v61  ;;  %vm614_vm7 = vcmask 211968  }
 0x1d4   : > { %1131 = vmatprep.subr.bf16.mxu1 %v712_v11  ;;  %v977_v21 = vsel %vm701_vm5, %v967_v1, %v900_v52  ;;  %v996_v34 = vsel %vm692_vm4, %v986_v60, %v2741_v48  ;;  %v984_v37 = vsel %vm679_vm1, %v2528_v3, %v2516_v63  ;;  %v2770_v39 = vsel %vm599_vm13, %v2552_v8, %v2560_v19 }
 0x1d5   : > { %v2710_v62 = vpop.permute.xlu0 %501  ;;  %1132 = vmatpush1.bf16.msra.mxu1 %v709_v42  ;;  %v2730_v43 = vpop.permute.xlu1 %507  ;;  %v2777_v45 = vsel %vm584_vm14, %v3038_v23, %v2530_v4  ;;  %v915_v9 = vsel %vm913_vm12, %v2536_v10, %v2534_v7  ;;  %v995_v3 = vsel %vm692_vm4, %v984_v37, %v2546_v26  ;;  %v2789_v13 = vsel %vm599_vm13, %v2554_v14, %v2552_v8 }
 0x1d6   : > { %v990_v20 = vsel %vm679_vm1, %v916_v32, %v2777_v45  ;;  %v2795_v15 = vsel %vm584_vm14, %v2524_v2, %v3038_v23  ;;  %v920_v8 = vsel %vm584_vm14, %v2530_v4, %v3039_v16  ;;  %v923_v2 = vsel %vm599_vm13, %v2560_v19, %v3040_v22 }
 0x1d7   : > { %1030 = vrot.lane.b32.xlu0 %v977_v21, %s1974_s17  ;;  %1026 = vrot.lane.b32.xlu1 %v973_v47, %s1974_s17  ;;  %v998_v7 = vsel %vm692_vm4, %v990_v20, %v2770_v39  ;;  %v988_v10 = vsel %vm679_vm1, %v915_v9, %v2795_v15  ;;  %v917_v41 = vsel %vm913_vm12, %v2542_v25, %v3041_v29  ;;  %vm644_vm8 = vcmask 138240  }
 0x1d8   : > { %v997_v14 = vsel %vm692_vm4, %v988_v10, %v2789_v13  ;;  %v993_v18 = vsel %vm679_vm1, %v917_v41, %v920_v8  ;;  %v511_v56 = vsel %vm509_vm2, %v2710_v62, %v2698_v44  ;;  %vm659_vm9 = vcmask 130048  }
 0x1d9   : > { %v2743_v53 = vpop.permute.xlu0 %505  ;;  %v519_v40 = vpop.permute.xlu1 %518  ;;  %v1000_v4 = vsel %vm692_vm4, %v993_v18, %v923_v2  ;;  %vm629_vm10 = vcmask 146432   ;;  %vm674_vm11 = vcmask 64512   ;;  %vm1046_vm12 = vcmask 56320  }
 0x1da   : > { %v513_v47 = vsel %vm509_vm2, %v2743_v53, %v2730_v43 }
 0x1db   : > { %1034 = vrot.lane.b32.xlu0 %v981_v0, %s1974_s17  ;;  %1038 = vrot.lane.b32.xlu1 %v996_v34, %s1974_s17 }
 0x1dd   : > { %v517_v46 = vpop.permute.xlu0 %516  ;;  %v523_v27 = vpop.permute.xlu1 %522 }
 0x1de   : > { %v526_v31 = vsel %vm524_vm15, %v517_v46, %v519_v40 }
 0x1df   : > { %1036 = vrot.lane.b32.xlu0 %v995_v3, %s1974_s17  ;;  %1042 = vrot.lane.b32.xlu1 %v998_v7, %s1974_s17  ;;  %v719_v42 = vsel %vm679_vm1, %v511_v56, %v526_v31 }
 0x1e1   : > { %v521_v33 = vpop.permute.xlu0 %520  ;;  %v515_v6 = vpop.permute.xlu1 %514 }
 0x1e2   : > { %v528_v17 = vsel %vm524_vm15, %v521_v33, %v523_v27  ;;  %v525_v24 = vsel %vm524_vm15, %v515_v6, %v517_v46  ;;  %v527_v54 = vsel %vm524_vm15, %v519_v40, %v521_v33  ;;  %v512_v40 = vsel %vm509_vm2, %v2698_v44, %v2743_v53 }
 0x1e3   : > { %1040 = vrot.lane.b32.xlu0 %v997_v14, %s1974_s17  ;;  %1071 = vperm.xlu1 %1669, %v1068_v38   ;;  %v725_v32 = vsel %vm679_vm1, %v513_v47, %v528_v17  ;;  %v722_v43 = vsel %vm679_vm1, %v512_v40, %v527_v54 }
 0x1e5   : > { %v500_v30 = vpop.permute.xlu0 %499  ;;  %v534_v28 = vpop.permute.xlu1 %533 }
 0x1e6   : > { %v510_v35 = vsel %vm509_vm2, %v500_v30, %v2710_v62 }
 0x1e7   : > { %1044 = vrot.lane.b32.xlu0 %v1000_v4, %s1974_s17  ;;  %v716_v5 = vsel %vm679_vm1, %v510_v35, %v525_v24 }
 0x1e9   : > { %v532_v36 = vpop.permute.xlu0 %531  ;;  %v538_v49 = vpop.permute.xlu1 %537 }
 0x1ea   : > { %v541_v25 = vsel %vm539_vm0, %v532_v36, %v534_v28 }
 0x1eb   : > { %v729_v51 = vsel %vm692_vm4, %v719_v42, %v541_v25 }
 0x1ed   : > { %v536_v52 = vpop.permute.xlu0 %535  ;;  %v547_v19 = vpop.permute.xlu1 %546 }
 0x1ee   : > { %v543_v50 = vsel %vm539_vm0, %v536_v52, %v538_v49  ;;  %v542_v58 = vsel %vm539_vm0, %v534_v28, %v536_v52 }
 0x1ef   : > { %v733_v9 = vsel %vm692_vm4, %v725_v32, %v543_v50  ;;  %v731_v27 = vsel %vm692_vm4, %v722_v43, %v542_v58 }
 0x1f1   : > { %v530_v11 = vpop.permute.xlu0 %529  ;;  %v551_v55 = vpop.permute.xlu1 %550 }
 0x1f2   : > { %v540_v59 = vsel %vm539_vm0, %v530_v11, %v532_v36 }
 0x1f3   : > { %v727_v60 = vsel %vm692_vm4, %v716_v5, %v540_v59 }
 0x1f5   : > { %v549_v1 = vpop.permute.xlu0 %548  ;;  %v545_v62 = vpop.permute.xlu1 %544 }
 0x1f6   : > { %v556_v21 = vsel %vm554_vm3, %v547_v19, %v549_v1  ;;  %v555_v0 = vsel %vm554_vm3, %v545_v62, %v547_v19  ;;  %v557_v34 = vsel %vm554_vm3, %v549_v1, %v551_v55 }
 0x1f7   : > { %v738_v57 = vsel %vm701_vm5, %v729_v51, %v556_v21  ;;  %v735_v46 = vsel %vm701_vm5, %v727_v60, %v555_v0  ;;  %v741_v44 = vsel %vm701_vm5, %v731_v27, %v557_v34 }
 0x1f8   : > { %1092 = vmatprep.subr.bf16.mxu0 %v738_v57 }
 0x1f9   : > { %v553_v37 = vpop.permute.xlu0 %552  ;;  %1093 = vmatpush1.bf16.msra.mxu0 %v735_v46  ;;  %v564_v3 = vpop.permute.xlu1 %563 }
 0x1fa   : > { %v558_v23 = vsel %vm554_vm3, %v551_v55, %v553_v37 }
 0x1fb   : > { %v744_v20 = vsel %vm701_vm5, %v733_v9, %v558_v23 }
 0x1fc   : > { %1133 = vmatprep.subr.bf16.mxu1 %v744_v20 }
 0x1fd   : > { %v562_v53 = vpop.permute.xlu0 %561  ;;  %1134 = vmatpush1.bf16.msra.mxu1 %v741_v44  ;;  %v568_v7 = vpop.permute.xlu1 %567 }
 0x1fe   : > { %v571_v14 = vsel %vm569_vm6, %v562_v53, %v564_v3 }
 0x1ff   : > { %v751_v22 = vsel %vm679_vm1, %v571_v14, %v2750_v61 }
 0x200   : > { %v761_v36 = vsel %vm692_vm4, %v751_v22, %v2741_v48 }
 0x201   : > { %v566_v10 = vpop.permute.xlu0 %565  ;;  %v575_v33 = vpop.permute.xlu1 %574 }
 0x202   : > { %v573_v6 = vsel %vm569_vm6, %v566_v10, %v568_v7  ;;  %v572_v41 = vsel %vm569_vm6, %v564_v3, %v566_v10  ;;  %v585_v4 = vsel %vm584_vm14, %v575_v33, %v2516_v63 }
 0x203   : > { %v757_v61 = vsel %vm679_vm1, %v573_v6, %v2777_v45 }
 0x204   : > { %v765_v55 = vsel %vm692_vm4, %v757_v61, %v2770_v39 }
 0x205   : > { %v560_v16 = vpop.permute.xlu0 %559  ;;  %v607_v8 = vpop.permute.xlu1 %606 }
 0x206   : > { %v570_v29 = vsel %vm569_vm6, %v560_v16, %v562_v53 }
 0x207   : > { %v748_v49 = vsel %vm679_vm1, %v570_v29, %v585_v4 }
 0x209   : > { %v590_v38 = vpop.permute.xlu0 %589  ;;  %v611_v2 = vpop.permute.xlu1 %610 }
 0x20a   : > { %v600_v18 = vsel %vm599_vm13, %v590_v38, %v2546_v26  ;;  %v754_v26 = vsel %vm679_vm1, %v572_v41, %v2795_v15 }
 0x20b   : > { %v759_v63 = vsel %vm692_vm4, %v748_v49, %v600_v18  ;;  %v763_v15 = vsel %vm692_vm4, %v754_v26, %v2789_v13 }
 0x20d   : > { %v609_v30 = vpop.permute.xlu0 %608  ;;  %v605_v52 = vpop.permute.xlu1 %604 }
 0x20e   : > { %v616_v28 = vsel %vm614_vm7, %v607_v8, %v609_v30  ;;  %v615_v11 = vsel %vm614_vm7, %v605_v52, %v607_v8  ;;  %v617_v31 = vsel %vm614_vm7, %v609_v30, %v611_v2 }
 0x20f   : > { %v770_v19 = vsel %vm701_vm5, %v761_v36, %v616_v28  ;;  %v767_v48 = vsel %vm701_vm5, %v759_v63, %v615_v11  ;;  %v773_v42 = vsel %vm701_vm5, %v763_v15, %v617_v31 }
 0x210   : > { %1094 = vmatprep.subr.bf16.mxu0 %v770_v19 }
 0x211   : > { %v613_v25 = vpop.permute.xlu0 %612  ;;  %1095 = vmatpush1.bf16.msra.mxu0 %v767_v48  ;;  %v624_v56 = vpop.permute.xlu1 %623 }
 0x212   : > { %v618_v45 = vsel %vm614_vm7, %v611_v2, %v613_v25 }
 0x213   : > { %v776_v35 = vsel %vm701_vm5, %v765_v55, %v618_v45 }
 0x214   : > { %1135 = vmatprep.subr.bf16.mxu1 %v776_v35 }
 0x215   : > { %v622_v59 = vpop.permute.xlu0 %621  ;;  %1136 = vmatpush1.bf16.msra.mxu1 %v773_v42  ;;  %v628_v1 = vpop.permute.xlu1 %627 }
 0x216   : > { %v631_v32 = vsel %vm629_vm10, %v622_v59, %v624_v56 }
 0x219   : > { %v626_v17 = vpop.permute.xlu0 %625  ;;  %v639_v24 = vpop.permute.xlu1 %638 }
 0x21a   : > { %v633_v33 = vsel %vm629_vm10, %v626_v17, %v628_v1  ;;  %v632_v38 = vsel %vm629_vm10, %v624_v56, %v626_v17 }
 0x21d   : > { %v637_v21 = vpop.permute.xlu0 %636  ;;  %v643_v51 = vpop.permute.xlu1 %642 }
 0x21e   : > { %v646_v0 = vsel %vm644_vm8, %v637_v21, %v639_v24 }
 0x21f   : > { %v783_v37 = vsel %vm679_vm1, %v631_v32, %v646_v0 }
 0x221   : > { %v641_v54 = vpop.permute.xlu0 %640  ;;  %v635_v5 = vpop.permute.xlu1 %634 }
 0x222   : > { %v648_v23 = vsel %vm644_vm8, %v641_v54, %v643_v51  ;;  %v645_v9 = vsel %vm644_vm8, %v635_v5, %v637_v21  ;;  %v647_v27 = vsel %vm644_vm8, %v639_v24, %v641_v54 }
 0x223   : > { %v789_v22 = vsel %vm679_vm1, %v633_v33, %v648_v23  ;;  %v786_v41 = vsel %vm679_vm1, %v632_v38, %v647_v27 }
 0x225   : > { %v620_v50 = vpop.permute.xlu0 %619  ;;  %v654_v39 = vpop.permute.xlu1 %653 }
 0x226   : > { %v630_v34 = vsel %vm629_vm10, %v620_v50, %v622_v59 }
 0x227   : > { %v780_v44 = vsel %vm679_vm1, %v630_v34, %v645_v9 }
 0x229   : > { %v652_v62 = vpop.permute.xlu0 %651  ;;  %v658_v57 = vpop.permute.xlu1 %657 }
 0x22a   : > { %v661_v60 = vsel %vm659_vm9, %v652_v62, %v654_v39 }
 0x22b   : > { %v793_v20 = vsel %vm692_vm4, %v783_v37, %v661_v60 }
 0x22d   : > { %v656_v47 = vpop.permute.xlu0 %655  ;;  %v667_v58 = vpop.permute.xlu1 %666 }
 0x22e   : > { %v663_v53 = vsel %vm659_vm9, %v656_v47, %v658_v57  ;;  %v662_v16 = vsel %vm659_vm9, %v654_v39, %v656_v47 }
 0x22f   : > { %v797_v30 = vsel %vm692_vm4, %v789_v22, %v663_v53  ;;  %v795_v36 = vsel %vm692_vm4, %v786_v41, %v662_v16 }
 0x231   : > { %v650_v13 = vpop.permute.xlu0 %649  ;;  %v671_v40 = vpop.permute.xlu1 %670 }
 0x232   : > { %v660_v46 = vsel %vm659_vm9, %v650_v13, %v652_v62  ;;  %v1067_v62 = vld [vmem:[#allocation7] sm:$0xf]  ;;  %v1189_v13 = vld [vmem:[#allocation11] sm:$0xf] }
 0x233   : > { %v791_v14 = vsel %vm692_vm4, %v780_v44, %v660_v46  ;;  %1192 = vperm.xlu0 %1670, %v1189_v13  }
 0x235   : > { %v669_v43 = vpop.permute.xlu0 %668  ;;  %v665_v7 = vpop.permute.xlu1 %664 }
 0x236   : > { %v676_v3 = vsel %vm674_vm11, %v667_v58, %v669_v43  ;;  %v675_v8 = vsel %vm674_vm11, %v665_v7, %v667_v58  ;;  %v677_v2 = vsel %vm674_vm11, %v669_v43, %v671_v40 }
 0x237   : > { %v802_v10 = vsel %vm701_vm5, %v793_v20, %v676_v3  ;;  %v799_v29 = vsel %vm701_vm5, %v791_v14, %v675_v8  ;;  %v805_v61 = vsel %vm701_vm5, %v795_v36, %v677_v2 }
 0x238   : > { %1096 = vmatprep.subr.bf16.mxu0 %v802_v10 }
 0x239   : > { %v673_v6 = vpop.permute.xlu0 %672  ;;  %1097 = vmatpush1.bf16.msra.mxu0 %v799_v29  ;;  %v1021_v4 = vpop.permute.xlu1 %1020 }
 0x23a   : > { %v678_v18 = vsel %vm674_vm11, %v671_v40, %v673_v6  ;;  %v1184_v6 = vld [vmem:[#allocation10] sm:$0x3] }
 0x23b   : > { %v808_v28 = vsel %vm701_vm5, %v797_v30, %v678_v18 }
 0x23c   : > { %1137 = vmatprep.subr.bf16.mxu1 %v808_v28 }
 0x23d   : > { %v1019_v49 = vpop.permute.xlu0 %1018  ;;  %1138 = vmatpush1.bf16.msra.mxu1 %v805_v61  ;;  %v1025_v19 = vpop.permute.xlu1 %1024 }
 0x23e   : > { %v1048_v52 = vsel %vm1046_vm12, %v1019_v49, %v1021_v4 }
 0x23f   : > { %1098 = vmatprep.subr.bf16.mxu0 %v1048_v52 }
 0x241   : > { %v1023_v26 = vpop.permute.xlu0 %1022  ;;  %v1029_v31 = vpop.permute.xlu1 %1028 }
 0x242   : > { %v1050_v11 = vsel %vm1046_vm12, %v1023_v26, %v1025_v19  ;;  %v1049_v63 = vsel %vm1046_vm12, %v1021_v4, %v1023_v26 }
 0x243   : > { %1139 = vmatprep.subr.bf16.mxu1 %v1050_v11 }
 0x244   : > { %1140 = vmatpush1.bf16.msra.mxu1 %v1049_v63 }
 0x245   : > { %v1017_v25 = vpop.permute.xlu0 %1016  ;;  %v1033_v45 = vpop.permute.xlu1 %1032 }
 0x246   : > { %v1047_v48 = vsel %vm1046_vm12, %v1017_v25, %v1019_v49 }
 0x247   : > { %1099 = vmatpush1.bf16.msra.mxu0 %v1047_v48 }
 0x249   : > { %v1031_v55 = vpop.permute.xlu0 %1030  ;;  %v1027_v35 = vpop.permute.xlu1 %1026 }
 0x24a   : > { %v1052_v56 = vsel %vm1046_vm12, %v1029_v31, %v1031_v55  ;;  %v1051_v15 = vsel %vm1046_vm12, %v1027_v35, %v1029_v31  ;;  %v1053_v1 = vsel %vm1046_vm12, %v1031_v55, %v1033_v45 }
 0x24b   : > { %1100 = vmatprep.subr.bf16.mxu0 %v1052_v56 }
 0x24c   : > { %1101 = vmatpush1.bf16.msra.mxu0 %v1051_v15 }
 0x24d   : > { %v1035_v42 = vpop.permute.xlu0 %1034  ;;  %v1039_v17 = vpop.permute.xlu1 %1038 }
 0x24e   : > { %v1054_v59 = vsel %vm1046_vm12, %v1033_v45, %v1035_v42 }
 0x24f   : > { %1141 = vmatprep.subr.bf16.mxu1 %v1054_v59 }
 0x250   : > { %1142 = vmatpush1.bf16.msra.mxu1 %v1053_v1 }
 0x251   : > { %v1037_v24 = vpop.permute.xlu0 %1036  ;;  %v1043_v5 = vpop.permute.xlu1 %1042 }
 0x252   : > { %v1055_v21 = vsel %vm1046_vm12, %v1037_v24, %v1039_v17 }
 0x253   : > { %v1079_v50 = vsel %vm701_vm5, %v1055_v21, 0 }
 0x255   : > { %v1041_v51 = vpop.permute.xlu0 %1040 }
 0x256   : > { %v1056_v54 = vsel %vm1046_vm12, %v1039_v17, %v1041_v51  ;;  %v1057_v39 = vsel %vm1046_vm12, %v1041_v51, %v1043_v5  ;;  %v3042_v17 = vld [vmem:[#allocation20_spill] sm:$0xff] }
 0x257   : > { %1519 = vmatprep.subr.msk.bf16.mxu0 %vm701_vm5, %v1056_v54  ;;  %v1085_v58 = vsel %vm701_vm5, %v1057_v39, 0 }
 0x258   : > { %1103 = vmatpush1.bf16.msra.mxu0 %v1079_v50 }
 0x259   : > { %v1045_v57 = vpop.permute.xlu0 %1044 }
 0x25a   : > { %v1058_v47 = vsel %vm1046_vm12, %v1043_v5, %v1045_v57 }
 0x25b   : > { %1521 = vmatprep.subr.msk.bf16.mxu1 %vm701_vm5, %v1058_v47  ;;  %1520 = vmatmul.mubr.msk.bf16.vlgmr.msra.gmra.mrb[0].mxu0 %vm539_vm0, %v1067_v62 }
 0x25c   : > { %1144 = vmatpush1.bf16.msra.mxu1 %v1085_v58  ;;  %1243 = vmatprep.mubr.bf16.mxu0 %v1975_v12 }
 0x25f   : > { %1522 = vmatmul.mubr.msk.bf16.vlgmr.msra.gmra.mrb[0].mxu1 %vm539_vm0, %v1067_v62 }
 0x260   : > { %1284 = vmatprep.mubr.bf16.mxu1 %v1975_v12 }
 0x262   : > { %v1072_v0 = vpop.permute.xlu1 %1071 }
 0x2b2   : > { %v1193_v18 = vpop.permute.xlu0 %1192 }
 0x32e   : > { %v1124_v60 = vpop.f32.mrb[0].mxu0 }
 0x32f   : > { %v1126_v40 = vpop.f32.mrb[1].mxu0  ;;  %v1125_v32 = vadd.f32 %v1124_v60, %v1072_v0 }
 0x330   : > { %v1127_v34 = vadd.f32 %v1126_v40, %v1072_v0  ;;  %v1128_v37 = vpop.f32.mrb[2].mxu0 }
 0x331   : > { %v1176_v46 = vmul.f32 0.01, %v1125_v32  ;;  %v1129_v43 = vpop.f32.mrb[3].mxu0  ;;  %vm1172_vm1 = vcmp.gt.f32.partialorder %v1125_v32, 0.0 }
 0x332   : > { %vm1173_vm13 = vcmp.gt.f32.partialorder %v1127_v34, 0.0  ;;  %v1177_v23 = vmul.f32 0.01, %v1127_v34  ;;  %v1165_v9 = vpop.f32.mrb[0].mxu1 }
 0x333   : > { %v1166_v3 = vadd.f32 %v1165_v9, %v1072_v0  ;;  %v1167_v20 = vpop.f32.mrb[1].mxu1  ;;  %v1180_v27 = vsel %vm1172_vm1, %v1125_v32, %v1176_v46 }
 0x334   : > { %v1168_v44 = vadd.f32 %v1167_v20, %v1072_v0  ;;  %v1169_v53 = vpop.f32.mrb[2].mxu1  ;;  %v1181_v12 = vsel %vm1173_vm13, %v1127_v34, %v1177_v23  ;;  %v1185_v7 = vpack.c.bf16 %v1180_v27, %v1180_v27 }
 0x335   : > { %vm1174_vm5 = vcmp.gt.f32.partialorder %v1166_v3, 0.0  ;;  %v1178_v10 = vmul.f32 0.01, %v1166_v3  ;;  %v1170_v33 = vpop.f32.mrb[3].mxu1  ;;  %v1186_v16 = vpack.c.bf16 %v1181_v12, %v1181_v12 }
 0x336   : > { %vm1175_vm14 = vcmp.gt.f32.partialorder %v1168_v44, 0.0  ;;  %v1179_v8 = vmul.f32 0.01, %v1168_v44  ;;  %v1200_v14 = vsel %vm692_vm4, %v1185_v7, 0 }
 0x337   : > { %v1182_v38 = vsel %vm1174_vm5, %v1166_v3, %v1178_v10  ;;  %1523 = vmatprep.subr.msk.bf16.mxu0 %vm692_vm4, %v1186_v16 }
 0x338   : > { %v1187_v22 = vpack.c.bf16 %v1182_v38, %v1182_v38  ;;  %v1183_v2 = vsel %vm1175_vm14, %v1168_v44, %v1179_v8  ;;  %1212 = vmatpush1.bf16.msra.mxu0 %v1200_v14 }
 0x339   : > { %v1188_v29 = vpack.c.bf16 %v1183_v2, %v1183_v2 }
 0x33a   : > { %v1206_v41 = vsel %vm692_vm4, %v1187_v22, 0 }
 0x33b   : > { %1525 = vmatprep.subr.msk.bf16.mxu1 %vm692_vm4, %v1188_v29  ;;  %1524 = vmatmul.mubr.msk.bf16.vlgmr.msra.gmra.mrb[4].mxu0 %vm674_vm11, %v1184_v6 }
 0x33c   : > { %1253 = vmatpush1.bf16.msra.mxu1 %v1206_v41 }
 0x33f   : > { %1526 = vmatmul.mubr.msk.bf16.vlgmr.msra.gmra.mrb[4].mxu1 %vm674_vm11, %v1184_v6 }
 0x40e   : > { %v1245_v30 = vpop.f32.mrb[4].mxu0 }
 0x40f   : > { %v1246_v4 = vadd.f32 %v1245_v30, %v1193_v18  ;;  %v1247_v28 = vpop.f32.mrb[5].mxu0 }
 0x410   : > { %v1248_v36 = vadd.f32 %v1247_v28, %v1193_v18  ;;  %v1249_v61 = vpop.f32.mrb[6].mxu0 }
 0x411   : > { %vm1293_vm15 = vcmp.gt.f32.partialorder %v1246_v4, 0.0  ;;  %v1297_v49 = vmul.f32 0.01, %v1246_v4  ;;  %v1250_v52 = vpop.f32.mrb[7].mxu0 }
 0x412   : > { %v1286_v19 = vpop.f32.mrb[4].mxu1  ;;  %vm1294_vm0 = vcmp.gt.f32.partialorder %v1248_v36, 0.0  ;;  %v1298_v26 = vmul.f32 0.01, %v1248_v36 }
 0x413   : > { %v1287_v11 = vadd.f32 %v1286_v19, %v1193_v18  ;;  %v1301_v63 = vsel %vm1293_vm15, %v1246_v4, %v1297_v49  ;;  %v1288_v31 = vpop.f32.mrb[5].mxu1 }
 0x414   : > { %v1302_v25 = vsel %vm1294_vm0, %v1248_v36, %v1298_v26  ;;  %v1289_v48 = vadd.f32 %v1288_v31, %v1193_v18  ;;  %v1290_v45 = vpop.f32.mrb[6].mxu1 }
 0x415   : > { %vm1295_vm4 = vcmp.gt.f32.partialorder %v1287_v11, 0.0  ;;  %v1299_v55 = vmul.f32 0.01, %v1287_v11  ;;  %v1527_v56 = vpack.c.bf16 %v1302_v25, %v1301_v63  ;;  %v1291_v35 = vpop.f32.mrb[7].mxu1 }
 0x416   : > { %vm1296_vm2 = vcmp.gt.f32.partialorder %v1289_v48, 0.0  ;;  %v1300_v15 = vmul.f32 0.01, %v1289_v48 }
 0x417   : > { %v1303_v42 = vsel %vm1295_vm4, %v1287_v11, %v1299_v55  ;;  %v1321_v24 = vrot.slane %v1527_v56, %v3042_v17 }
 0x418   : > { %v1304_v59 = vsel %vm1296_vm2, %v1289_v48, %v1300_v15 }
 0x419   : > { %v1528_v1 = vpack.c.bf16 %v1304_v59, %v1303_v42 }
 0x41b   : > { %v1328_v21 = vrot.slane %v1528_v1, %v3042_v17 }
 0x41d   : > { %v1329_v51 = vcombine.low %v1321_v24, %v1328_v21 }
 0x41f   : > { %1331 = vst [vmem:[%s395_s0] sm:$0xff] %v1329_v51 }
 0x420   : > { %1858 = shalt.err (!%p1855_p11)
}
 0x421   : > { %s1859_s5 = scalar_lea.hbm %s2940_s30, 128  ;;  %s1863_s19 = scalar_lea.hbm %s2995_s6, 256 }
 0x422   : > { %p1860_p5 = scmp.ne.s32.totalorder %s2940_s30, %s1859_s5  ;;  %p1864_p8 = scmp.lt.u32.totalorder %s2940_s30, %s2995_s6 }
 0x423   : > { %p1865_p9 = scmp.lt.u32.totalorder %s1863_s19, %s1859_s5  ;;  %p1867_p6 = scmp.lt.u32.totalorder %s1859_s5, %s2940_s30 }
 0x424   : > { %p1861_p7 = pnand %p1860_p5, %p3043_p3 }
 0x425   : > { %p1866_p4 = por %p1865_p9, %p1864_p8 }
 0x426   : > { %p1862_p2 = pneg %p1861_p7 }
 0x427   : > { %p1868_p12 = por %p1867_p6, %p1866_p4 }
 0x429   : > { %p1869_p0 = pnand %p1868_p12, %p1862_p2 }
 0x42b   : > { %1872 = shalt.err (!%p1869_p0)
}
 0x42c   : > { %1556 = dma.vmem_to_hbm [thread:$0]  (%p3043_p3), %s2942_s3, 128, %s2940_s30, %s1333_s24  }
 0x42d PF: > { %s1361_s10 = sand.u32 1, %s1923_s21   ;;  %p3044_p10 = scmp.ne.s32.totalorder %s3020_s7, 0 }
 0x42e   : > { %p3045_p13 = scmp.ge.s32.totalorder %s1943_s26, 2  ;;  %s1362_s15 = scalar_lea.sflag [#allocation4], %s1361_s10 }
 0x430   : > { %p1579_p1 = pnand %p3045_p13, %p3044_p10 }
 0x432   : > { %1918 = dma.done.wait (!%p1579_p1), %s1362_s15, 128  }
 0x433   : > { %1920 = vsyncadd (!%p1579_p1), %s1362_s15, 4294967168  ;;  %s27_s26 = sadd.s32 1, %s1943_s26   ;;  %s3046_s21 = smov %s1927_s22 }
 0x434   : > { %p24_p11 = scmp.ge.s32.totalorder %s27_s26, 4   ;;  %s3047_s22 = smov %s1931_s23 }
 0x435   : > { %s3048_s23 = smov %s2181_s29  ;;  %s3049_s24 = smov %s1939_s25 }
 0x436   : > { %s3050_s25 = smov %s3052_s16  ;;  %26 = sbr.rel (!%p24_p11) target bundleno = 16 (0x10), region = 118 }
 0x43d   :  { %1367 = vsyncpa [#allocation3], 1 }
 0x43e   :  { %1369 = vsyncpa [#allocation3 + $0x1], 1 }
 0x43f   :  { %1370 = vsyncpa [#allocation6], 1 }
 0x440   :  { %1372 = vsyncpa [#allocation6 + $0x1], 1 }
 0x441   :  { %1373 = vsyncpa [#allocation9], 1 }
 0x442   :  { %1374 = vsyncpa [#allocation12], 1 }
 0x443   :  { %1375 = vsyncpa [#allocation4], 1 }
 0x444   :  { %1377 = vsyncpa [#allocation4 + $0x1], 1 }

</bundles_post_ra>
